<compile_context>
chip_gen: v5e
topology: v5e:2x2
jax: 0.10.0
libtpu: 0.0.40
codegen_flags: <defaults>
</compile_context>

<pallas_src>
import jax
import jax.numpy as jnp
from jax import lax
from jax.experimental import pallas as pl
from jax.experimental.pallas import tpu as pltpu

HIDDEN = 32
NUM_HEADS = 4
HEAD_DIM = HIDDEN // NUM_HEADS
FF_DIM = 64
LN_EPS = 1e-5
SCALE = HEAD_DIM ** -0.5


# ----------------------------- kernel helpers ------------------------------
def _layer_norm(z, gamma, beta):
    mu = jnp.mean(z, axis=-1, keepdims=True)
    var = jnp.mean((z - mu) ** 2, axis=-1, keepdims=True)
    return (z - mu) * lax.rsqrt(var + LN_EPS) * gamma + beta


def _mha(xq, xkv, w_ref, b_ref, base):
    """Multi-head attention for one batch element.

    xq: (Sq, D) query-side input, xkv: (Sk, D) key/value-side input.
    w_ref[base + {0,1,2,3}] are the q/k/v/out projection weights (D, D),
    b_ref[base + {0,1,2,3}] the corresponding biases (1, D).
    """
    q = jnp.dot(xq, w_ref[base + 0], preferred_element_type=jnp.float32) + b_ref[base + 0]
    k = jnp.dot(xkv, w_ref[base + 1], preferred_element_type=jnp.float32) + b_ref[base + 1]
    v = jnp.dot(xkv, w_ref[base + 2], preferred_element_type=jnp.float32) + b_ref[base + 2]

    ctx_heads = []
    for h in range(NUM_HEADS):          # static unroll (NUM_HEADS = 4)
        sl = slice(h * HEAD_DIM, (h + 1) * HEAD_DIM)
        qh, kh, vh = q[:, sl], k[:, sl], v[:, sl]
        # scores = qh @ kh.T  (contract the head dim of both operands)
        s = lax.dot_general(qh, kh, (((1,), (1,)), ((), ())),
                            preferred_element_type=jnp.float32) * SCALE     # (Sq, Sk)
        s = s - jnp.max(s, axis=-1, keepdims=True)
        e = jnp.exp(s)
        p = e / jnp.sum(e, axis=-1, keepdims=True)     # softmax; dropout = identity
        ctx_heads.append(jnp.dot(p, vh, preferred_element_type=jnp.float32))
    ctx = jnp.concatenate(ctx_heads, axis=-1)          # (Sq, D)
    return jnp.dot(ctx, w_ref[base + 3], preferred_element_type=jnp.float32) + b_ref[base + 3]


# -------------------------------- kernel -----------------------------------
def _decoder_layer_kernel(x_ref, mem_ref, attn_w_ref, attn_b_ref, ln_ref,
                          fc1w_ref, fc1b_ref, fc2w_ref, fc2b_ref, out_ref):
    x = x_ref[0]          # (S, D)
    mem = mem_ref[0]      # (Smem, D)

    # --- self-attention sub-block:  x = x + self_attn(norm1(x)) ------------
    residual = x
    xn = _layer_norm(x, ln_ref[0], ln_ref[1])
    x = residual + _mha(xn, xn, attn_w_ref, attn_b_ref, base=0)

    # --- cross-attention sub-block: x = x + cross_attn(norm2(x), memory) ---
    residual = x
    xn = _layer_norm(x, ln_ref[2], ln_ref[3])
    x = residual + _mha(xn, mem, attn_w_ref, attn_b_ref, base=4)

    # --- feed-forward:  x = x + (fc2(relu(fc1(norm(x)))) + x)  -------------
    # (PositionWiseFeedForward adds its own residual; the outer forward adds
    #  x again, exactly as the PyTorch code is written.)
    z = _layer_norm(x, ln_ref[4], ln_ref[5])
    z = jnp.maximum(
        jnp.dot(z, fc1w_ref[...], preferred_element_type=jnp.float32) + fc1b_ref[...], 0.0)
    z = jnp.dot(z, fc2w_ref[...], preferred_element_type=jnp.float32) + fc2b_ref[...]
    x = x + (z + x)

    out_ref[0] = x.astype(out_ref.dtype)


# -------------------------------- wrapper -----------------------------------
def transformer_decoder_layer(x, memory, params):
    """x: (B, S, D) f32, memory: (B, Smem, D) f32."""
    B, S, D = x.shape
    _, SM, _ = memory.shape

    def full_spec(shape):
        return pl.BlockSpec(shape, lambda b, _n=len(shape): (0,) * _n)

    inputs = (x, memory,
              params["attn_w"], params["attn_b"], params["ln"],
              params["fc1_w"], params["fc1_b"], params["fc2_w"], params["fc2_b"])

    grid_spec = pltpu.PrefetchScalarGridSpec(
        num_scalar_prefetch=0,
        grid=(B,),
        in_specs=[
            pl.BlockSpec((1, S, D), lambda b: (b, 0, 0)),     # x (per-batch block)
            pl.BlockSpec((1, SM, D), lambda b: (b, 0, 0)),    # memory (per-batch block)
            full_spec((8, D, D)),                             # attn weights (q,k,v,o)x2
            full_spec((8, 1, D)),                             # attn biases
            full_spec((6, 1, D)),                             # LN gamma/beta x3
            full_spec((D, FF_DIM)),
            full_spec((1, FF_DIM)),
            full_spec((FF_DIM, D)),
            full_spec((1, D)),
        ],
        out_specs=pl.BlockSpec((1, S, D), lambda b: (b, 0, 0)),
    )

    # Advisory cost hint for XLA scheduling.
    flops = 2 * B * (4 * S * D * D            # self-attn q/k/v/out projections
                     + 2 * S * D * D          # cross-attn q/out projections
                     + 2 * SM * D * D         # cross-attn k/v projections
                     + 2 * S * S * D          # self-attn scores + ctx
                     + 2 * S * SM * D         # cross-attn scores + ctx
                     + 2 * S * D * FF_DIM)    # feed-forward
    transcendentals = B * NUM_HEADS * (S * S + S * SM) + 3 * B * S
    bytes_accessed = sum(int(a.size) * a.dtype.itemsize for a in inputs) + B * S * D * 4

    return pl.pallas_call(
        _decoder_layer_kernel,
        out_shape=jax.ShapeDtypeStruct((B, S, D), x.dtype),
        grid_spec=grid_spec,
        compiler_params=pltpu.CompilerParams(dimension_semantics=("parallel",)),
        cost_estimate=pl.CostEstimate(flops=flops,
                                      transcendentals=transcendentals,
                                      bytes_accessed=bytes_accessed),
    )(*inputs)


# ----------------------------- parameter init ------------------------------
def init_params(key, d=HIDDEN, ff=FF_DIM):
    keys = list(jax.random.split(key, 24))
    kit = iter(keys)

    def linear(fan_in, fan_out, xavier=False):
        kw, kb = next(kit), next(kit)
        if xavier:  # nn.init.xavier_uniform_
            w_bound = (6.0 / (fan_in + fan_out)) ** 0.5
        else:       # nn.Linear default
            w_bound = 1.0 / (fan_in ** 0.5)
        b_bound = 1.0 / (fan_in ** 0.5)
        w = jax.random.uniform(kw, (fan_in, fan_out), jnp.float32, -w_bound, w_bound)
        b = jax.random.uniform(kb, (fan_out,), jnp.float32, -b_bound, b_bound)
        return w, b

    attn_w, attn_b = [], []
    for _attn in range(2):              # self_attn, cross_attn
        for _proj in range(4):          # q, k, v, out
            w, b = linear(d, d, xavier=True)
            attn_w.append(w)
            attn_b.append(b.reshape(1, d))

    fc1_w, fc1_b = linear(d, ff)
    fc2_w, fc2_b = linear(ff, d)

    ones, zeros = jnp.ones((1, d), jnp.float32), jnp.zeros((1, d), jnp.float32)
    ln = jnp.stack([ones, zeros, ones, zeros, ones, zeros])   # norm1, norm2, ffn.norm

    return {
        "attn_w": jnp.stack(attn_w),        # (8, D, D)
        "attn_b": jnp.stack(attn_b),        # (8, 1, D)
        "ln": ln,                           # (6, 1, D)
        "fc1_w": fc1_w, "fc1_b": fc1_b.reshape(1, ff),
        "fc2_w": fc2_w, "fc2_b": fc2_b.reshape(1, d),
    }


# ----------------------------- pure-JAX reference --------------------------
def reference(x, memory, p):
    def ln_(z, g, b):
        mu = z.mean(-1, keepdims=True)
        var = ((z - mu) ** 2).mean(-1, keepdims=True)
        return (z - mu) / jnp.sqrt(var + LN_EPS) * g + b

    def mha(xq, xkv, base):
        q = xq @ p["attn_w"][base + 0] + p["attn_b"][base + 0]
        k = xkv @ p["attn_w"][base + 1] + p["attn_b"][base + 1]
        v = xkv @ p["attn_w"][base + 2] + p["attn_b"][base + 2]
        B, Sq, _ = q.shape
        Sk = k.shape[1]
        qh = q.reshape(B, Sq, NUM_HEADS, HEAD_DIM).transpose(0, 2, 1, 3)
        kh = k.reshape(B, Sk, NUM_HEADS, HEAD_DIM).transpose(0, 2, 1, 3)
        vh = v.reshape(B, Sk, NUM_HEADS, HEAD_DIM).transpose(0, 2, 1, 3)
        s = jnp.einsum("bhqd,bhkd->bhqk", qh, kh) * SCALE
        a = jax.nn.softmax(s, axis=-1)
        ctx = jnp.einsum("bhqk,bhkd->bhqd", a, vh)
        ctx = ctx.transpose(0, 2, 1, 3).reshape(B, Sq, HIDDEN)
        return ctx @ p["attn_w"][base + 3] + p["attn_b"][base + 3]

    r = x
    xn = ln_(x, p["ln"][0], p["ln"][1])
    x = r + mha(xn, xn, 0)
    r = x
    xn = ln_(x, p["ln"][2], p["ln"][3])
    x = r + mha(xn, memory, 4)
    z = ln_(x, p["ln"][4], p["ln"][5])
    z = jnp.maximum(z @ p["fc1_w"] + p["fc1_b"], 0.0)
    z = z @ p["fc2_w"] + p["fc2_b"]
    return x + (z + x)


if __name__ == "__main__":
    key = jax.random.PRNGKey(0)
    kx, km, kp = jax.random.split(key, 3)
    B, S, SM = 2, 8, 16
    x = jax.random.normal(kx, (B, S, HIDDEN), jnp.float32)
    memory = jax.random.normal(km, (B, SM, HIDDEN), jnp.float32)
    params = init_params(kp)

    out = jax.block_until_ready(transformer_decoder_layer(x, memory, params))
    ref = reference(x, memory, params)

    assert out.shape == (B, S, HIDDEN)
    err = float(jnp.max(jnp.abs(out - ref)))
    assert jnp.allclose(out, ref, atol=1e-3, rtol=1e-3), f"mismatch vs reference, max abs err={err:e}"
    print("KERNEL_OK")
</pallas_src>

<mosaic_0001>
module attributes {stable_mosaic.version = 11 : i64} {
  func.func @_decoder_layer_kernel(%arg0: i32, %arg1: memref<1x8x32xf32, #tpu.memory_space<vmem>>, %arg2: memref<1x16x32xf32, #tpu.memory_space<vmem>>, %arg3: memref<8x32x32xf32, #tpu.memory_space<vmem>>, %arg4: memref<8x1x32xf32, #tpu.memory_space<vmem>>, %arg5: memref<6x1x32xf32, #tpu.memory_space<vmem>>, %arg6: memref<32x64xf32, #tpu.memory_space<vmem>>, %arg7: memref<1x64xf32, #tpu.memory_space<vmem>>, %arg8: memref<64x32xf32, #tpu.memory_space<vmem>>, %arg9: memref<1x32xf32, #tpu.memory_space<vmem>>, %arg10: memref<1x8x32xf32, #tpu.memory_space<vmem>>) attributes {dimension_semantics = [#tpu.dimension_semantics<parallel>], iteration_bounds = array<i64: 2>, scalar_prefetch = 0 : i64, scratch_operands = 0 : i64, tpu.core_type = #tpu.core_type<tc>, window_params = [{transform_indices = @transform_0, window_bounds = array<i64: 1, 8, 32>}, {transform_indices = @transform_1, window_bounds = array<i64: 1, 16, 32>}, {pipeline_mode = #tpu.pipeline_mode<synchronous>, transform_indices = @transform_2, window_bounds = array<i64: 8, 32, 32>}, {pipeline_mode = #tpu.pipeline_mode<synchronous>, transform_indices = @transform_3, window_bounds = array<i64: 8, 1, 32>}, {pipeline_mode = #tpu.pipeline_mode<synchronous>, transform_indices = @transform_4, window_bounds = array<i64: 6, 1, 32>}, {pipeline_mode = #tpu.pipeline_mode<synchronous>, transform_indices = @transform_5, window_bounds = array<i64: 32, 64>}, {pipeline_mode = #tpu.pipeline_mode<synchronous>, transform_indices = @transform_6, window_bounds = array<i64: 1, 64>}, {pipeline_mode = #tpu.pipeline_mode<synchronous>, transform_indices = @transform_7, window_bounds = array<i64: 64, 32>}, {pipeline_mode = #tpu.pipeline_mode<synchronous>, transform_indices = @transform_8, window_bounds = array<i64: 1, 32>}, {transform_indices = @transform_9, window_bounds = array<i64: 1, 8, 32>}]} {
    %c0 = arith.constant 0 : index
    %c0_0 = arith.constant 0 : index
    %c0_1 = arith.constant 0 : index
    %0 = vector.load %arg1[%c0, %c0_0, %c0_1] : memref<1x8x32xf32, #tpu.memory_space<vmem>>, vector<1x8x32xf32>
    %1 = vector.shape_cast %0 : vector<1x8x32xf32> to vector<8x32xf32>
    %c0_2 = arith.constant 0 : index
    %c0_3 = arith.constant 0 : index
    %c0_4 = arith.constant 0 : index
    %2 = vector.load %arg2[%c0_2, %c0_3, %c0_4] : memref<1x16x32xf32, #tpu.memory_space<vmem>>, vector<1x16x32xf32>
    %3 = vector.shape_cast %2 : vector<1x16x32xf32> to vector<16x32xf32>
    %c0_5 = arith.constant 0 : index
    %c0_6 = arith.constant 0 : index
    %c0_7 = arith.constant 0 : index
    %4 = vector.load %arg5[%c0_5, %c0_6, %c0_7] : memref<6x1x32xf32, #tpu.memory_space<vmem>>, vector<1x1x32xf32>
    %5 = vector.shape_cast %4 : vector<1x1x32xf32> to vector<1x32xf32>
    %c1 = arith.constant 1 : index
    %c0_8 = arith.constant 0 : index
    %c0_9 = arith.constant 0 : index
    %6 = vector.load %arg5[%c1, %c0_8, %c0_9] : memref<6x1x32xf32, #tpu.memory_space<vmem>>, vector<1x1x32xf32>
    %7 = vector.shape_cast %6 : vector<1x1x32xf32> to vector<1x32xf32>
    %cst = arith.constant dense<0.000000e+00> : vector<8xf32>
    %8 = vector.multi_reduction <add>, %1, %cst [1] : vector<8x32xf32> to vector<8xf32>
    %9 = vector.shape_cast %8 : vector<8xf32> to vector<8x1xf32>
    %cst_10 = arith.constant 3.200000e+01 : f32
    %10 = vector.broadcast %cst_10 : f32 to vector<8x1xf32>
    %11 = arith.divf %9, %10 : vector<8x1xf32>
    %12 = vector.broadcast %11 : vector<8x1xf32> to vector<8x32xf32>
    %13 = arith.subf %1, %12 : vector<8x32xf32>
    %14 = arith.mulf %13, %13 : vector<8x32xf32>
    %cst_11 = arith.constant dense<0.000000e+00> : vector<8xf32>
    %15 = vector.multi_reduction <add>, %14, %cst_11 [1] : vector<8x32xf32> to vector<8xf32>
    %16 = vector.shape_cast %15 : vector<8xf32> to vector<8x1xf32>
    %cst_12 = arith.constant 3.200000e+01 : f32
    %17 = vector.broadcast %cst_12 : f32 to vector<8x1xf32>
    %18 = arith.divf %16, %17 : vector<8x1xf32>
    %19 = vector.broadcast %11 : vector<8x1xf32> to vector<8x32xf32>
    %20 = arith.subf %1, %19 : vector<8x32xf32>
    %cst_13 = arith.constant 9.99999974E-6 : f32
    %21 = vector.broadcast %cst_13 : f32 to vector<8x1xf32>
    %22 = arith.addf %18, %21 : vector<8x1xf32>
    %23 = math.rsqrt %22 : vector<8x1xf32>
    %24 = vector.broadcast %23 : vector<8x1xf32> to vector<8x32xf32>
    %25 = arith.mulf %20, %24 : vector<8x32xf32>
    %26 = vector.broadcast %5 : vector<1x32xf32> to vector<8x32xf32>
    %27 = arith.mulf %25, %26 : vector<8x32xf32>
    %28 = vector.broadcast %7 : vector<1x32xf32> to vector<8x32xf32>
    %29 = arith.addf %27, %28 : vector<8x32xf32>
    %c0_14 = arith.constant 0 : index
    %c0_15 = arith.constant 0 : index
    %c0_16 = arith.constant 0 : index
    %30 = vector.load %arg3[%c0_14, %c0_15, %c0_16] : memref<8x32x32xf32, #tpu.memory_space<vmem>>, vector<1x32x32xf32>
    %31 = vector.shape_cast %30 : vector<1x32x32xf32> to vector<32x32xf32>
    %cst_17 = arith.constant dense<0.000000e+00> : vector<8x32xf32>
    %32 = tpu.matmul %29, %31, %cst_17 {dimension_numbers = #tpu.dot_dimension_numbers<[1], [0], [0], [1], [0, 0, 1, 1], [], []>} : vector<8x32xf32>, vector<32x32xf32>, vector<8x32xf32> -> vector<8x32xf32>
    %c0_18 = arith.constant 0 : index
    %c0_19 = arith.constant 0 : index
    %c0_20 = arith.constant 0 : index
    %33 = vector.load %arg4[%c0_18, %c0_19, %c0_20] : memref<8x1x32xf32, #tpu.memory_space<vmem>>, vector<1x1x32xf32>
    %34 = vector.shape_cast %33 : vector<1x1x32xf32> to vector<1x32xf32>
    %35 = vector.broadcast %34 : vector<1x32xf32> to vector<8x32xf32>
    %36 = arith.addf %32, %35 : vector<8x32xf32>
    %c1_21 = arith.constant 1 : index
    %c0_22 = arith.constant 0 : index
    %c0_23 = arith.constant 0 : index
    %37 = vector.load %arg3[%c1_21, %c0_22, %c0_23] : memref<8x32x32xf32, #tpu.memory_space<vmem>>, vector<1x32x32xf32>
    %38 = vector.shape_cast %37 : vector<1x32x32xf32> to vector<32x32xf32>
    %cst_24 = arith.constant dense<0.000000e+00> : vector<8x32xf32>
    %39 = tpu.matmul %29, %38, %cst_24 {dimension_numbers = #tpu.dot_dimension_numbers<[1], [0], [0], [1], [0, 0, 1, 1], [], []>} : vector<8x32xf32>, vector<32x32xf32>, vector<8x32xf32> -> vector<8x32xf32>
    %c1_25 = arith.constant 1 : index
    %c0_26 = arith.constant 0 : index
    %c0_27 = arith.constant 0 : index
    %40 = vector.load %arg4[%c1_25, %c0_26, %c0_27] : memref<8x1x32xf32, #tpu.memory_space<vmem>>, vector<1x1x32xf32>
    %41 = vector.shape_cast %40 : vector<1x1x32xf32> to vector<1x32xf32>
    %42 = vector.broadcast %41 : vector<1x32xf32> to vector<8x32xf32>
    %43 = arith.addf %39, %42 : vector<8x32xf32>
    %c2 = arith.constant 2 : index
    %c0_28 = arith.constant 0 : index
    %c0_29 = arith.constant 0 : index
    %44 = vector.load %arg3[%c2, %c0_28, %c0_29] : memref<8x32x32xf32, #tpu.memory_space<vmem>>, vector<1x32x32xf32>
    %45 = vector.shape_cast %44 : vector<1x32x32xf32> to vector<32x32xf32>
    %cst_30 = arith.constant dense<0.000000e+00> : vector<8x32xf32>
    %46 = tpu.matmul %29, %45, %cst_30 {dimension_numbers = #tpu.dot_dimension_numbers<[1], [0], [0], [1], [0, 0, 1, 1], [], []>} : vector<8x32xf32>, vector<32x32xf32>, vector<8x32xf32> -> vector<8x32xf32>
    %c2_31 = arith.constant 2 : index
    %c0_32 = arith.constant 0 : index
    %c0_33 = arith.constant 0 : index
    %47 = vector.load %arg4[%c2_31, %c0_32, %c0_33] : memref<8x1x32xf32, #tpu.memory_space<vmem>>, vector<1x1x32xf32>
    %48 = vector.shape_cast %47 : vector<1x1x32xf32> to vector<1x32xf32>
    %49 = vector.broadcast %48 : vector<1x32xf32> to vector<8x32xf32>
    %50 = arith.addf %46, %49 : vector<8x32xf32>
    %51 = vector.extract_strided_slice %36 {offsets = [0, 0], sizes = [8, 8], strides = [1, 1]} : vector<8x32xf32> to vector<8x8xf32>
    %52 = vector.extract_strided_slice %43 {offsets = [0, 0], sizes = [8, 8], strides = [1, 1]} : vector<8x32xf32> to vector<8x8xf32>
    %53 = vector.extract_strided_slice %50 {offsets = [0, 0], sizes = [8, 8], strides = [1, 1]} : vector<8x32xf32> to vector<8x8xf32>
    %cst_34 = arith.constant dense<0.000000e+00> : vector<8x8xf32>
    %54 = tpu.matmul %51, %52, %cst_34 {dimension_numbers = #tpu.dot_dimension_numbers<[1], [1], [0], [0], [0, 0, 1, 0], [], []>} : vector<8x8xf32>, vector<8x8xf32>, vector<8x8xf32> -> vector<8x8xf32>
    %cst_35 = arith.constant 0.353553385 : f32
    %55 = vector.broadcast %cst_35 : f32 to vector<8x8xf32>
    %56 = arith.mulf %54, %55 : vector<8x8xf32>
    %cst_36 = arith.constant dense<0xFF800000> : vector<8xf32>
    %57 = vector.multi_reduction <maximumf>, %56, %cst_36 [1] : vector<8x8xf32> to vector<8xf32>
    %58 = vector.shape_cast %57 : vector<8xf32> to vector<8x1xf32>
    %59 = vector.broadcast %58 : vector<8x1xf32> to vector<8x8xf32>
    %60 = arith.subf %56, %59 : vector<8x8xf32>
    %61 = math.exp %60 : vector<8x8xf32>
    %cst_37 = arith.constant dense<0.000000e+00> : vector<8xf32>
    %62 = vector.multi_reduction <add>, %61, %cst_37 [1] : vector<8x8xf32> to vector<8xf32>
    %63 = vector.shape_cast %62 : vector<8xf32> to vector<8x1xf32>
    %64 = vector.broadcast %63 : vector<8x1xf32> to vector<8x8xf32>
    %65 = arith.divf %61, %64 : vector<8x8xf32>
    %cst_38 = arith.constant dense<0.000000e+00> : vector<8x8xf32>
    %66 = tpu.matmul %65, %53, %cst_38 {dimension_numbers = #tpu.dot_dimension_numbers<[1], [0], [0], [1], [0, 0, 1, 1], [], []>} : vector<8x8xf32>, vector<8x8xf32>, vector<8x8xf32> -> vector<8x8xf32>
    %67 = vector.extract_strided_slice %36 {offsets = [0, 8], sizes = [8, 8], strides = [1, 1]} : vector<8x32xf32> to vector<8x8xf32>
    %68 = vector.extract_strided_slice %43 {offsets = [0, 8], sizes = [8, 8], strides = [1, 1]} : vector<8x32xf32> to vector<8x8xf32>
    %69 = vector.extract_strided_slice %50 {offsets = [0, 8], sizes = [8, 8], strides = [1, 1]} : vector<8x32xf32> to vector<8x8xf32>
    %cst_39 = arith.constant dense<0.000000e+00> : vector<8x8xf32>
    %70 = tpu.matmul %67, %68, %cst_39 {dimension_numbers = #tpu.dot_dimension_numbers<[1], [1], [0], [0], [0, 0, 1, 0], [], []>} : vector<8x8xf32>, vector<8x8xf32>, vector<8x8xf32> -> vector<8x8xf32>
    %cst_40 = arith.constant 0.353553385 : f32
    %71 = vector.broadcast %cst_40 : f32 to vector<8x8xf32>
    %72 = arith.mulf %70, %71 : vector<8x8xf32>
    %cst_41 = arith.constant dense<0xFF800000> : vector<8xf32>
    %73 = vector.multi_reduction <maximumf>, %72, %cst_41 [1] : vector<8x8xf32> to vector<8xf32>
    %74 = vector.shape_cast %73 : vector<8xf32> to vector<8x1xf32>
    %75 = vector.broadcast %74 : vector<8x1xf32> to vector<8x8xf32>
    %76 = arith.subf %72, %75 : vector<8x8xf32>
    %77 = math.exp %76 : vector<8x8xf32>
    %cst_42 = arith.constant dense<0.000000e+00> : vector<8xf32>
    %78 = vector.multi_reduction <add>, %77, %cst_42 [1] : vector<8x8xf32> to vector<8xf32>
    %79 = vector.shape_cast %78 : vector<8xf32> to vector<8x1xf32>
    %80 = vector.broadcast %79 : vector<8x1xf32> to vector<8x8xf32>
    %81 = arith.divf %77, %80 : vector<8x8xf32>
    %cst_43 = arith.constant dense<0.000000e+00> : vector<8x8xf32>
    %82 = tpu.matmul %81, %69, %cst_43 {dimension_numbers = #tpu.dot_dimension_numbers<[1], [0], [0], [1], [0, 0, 1, 1], [], []>} : vector<8x8xf32>, vector<8x8xf32>, vector<8x8xf32> -> vector<8x8xf32>
    %83 = vector.extract_strided_slice %36 {offsets = [0, 16], sizes = [8, 8], strides = [1, 1]} : vector<8x32xf32> to vector<8x8xf32>
    %84 = vector.extract_strided_slice %43 {offsets = [0, 16], sizes = [8, 8], strides = [1, 1]} : vector<8x32xf32> to vector<8x8xf32>
    %85 = vector.extract_strided_slice %50 {offsets = [0, 16], sizes = [8, 8], strides = [1, 1]} : vector<8x32xf32> to vector<8x8xf32>
    %cst_44 = arith.constant dense<0.000000e+00> : vector<8x8xf32>
    %86 = tpu.matmul %83, %84, %cst_44 {dimension_numbers = #tpu.dot_dimension_numbers<[1], [1], [0], [0], [0, 0, 1, 0], [], []>} : vector<8x8xf32>, vector<8x8xf32>, vector<8x8xf32> -> vector<8x8xf32>
    %cst_45 = arith.constant 0.353553385 : f32
    %87 = vector.broadcast %cst_45 : f32 to vector<8x8xf32>
    %88 = arith.mulf %86, %87 : vector<8x8xf32>
    %cst_46 = arith.constant dense<0xFF800000> : vector<8xf32>
    %89 = vector.multi_reduction <maximumf>, %88, %cst_46 [1] : vector<8x8xf32> to vector<8xf32>
    %90 = vector.shape_cast %89 : vector<8xf32> to vector<8x1xf32>
    %91 = vector.broadcast %90 : vector<8x1xf32> to vector<8x8xf32>
    %92 = arith.subf %88, %91 : vector<8x8xf32>
    %93 = math.exp %92 : vector<8x8xf32>
    %cst_47 = arith.constant dense<0.000000e+00> : vector<8xf32>
    %94 = vector.multi_reduction <add>, %93, %cst_47 [1] : vector<8x8xf32> to vector<8xf32>
    %95 = vector.shape_cast %94 : vector<8xf32> to vector<8x1xf32>
    %96 = vector.broadcast %95 : vector<8x1xf32> to vector<8x8xf32>
    %97 = arith.divf %93, %96 : vector<8x8xf32>
    %cst_48 = arith.constant dense<0.000000e+00> : vector<8x8xf32>
    %98 = tpu.matmul %97, %85, %cst_48 {dimension_numbers = #tpu.dot_dimension_numbers<[1], [0], [0], [1], [0, 0, 1, 1], [], []>} : vector<8x8xf32>, vector<8x8xf32>, vector<8x8xf32> -> vector<8x8xf32>
    %99 = vector.extract_strided_slice %36 {offsets = [0, 24], sizes = [8, 8], strides = [1, 1]} : vector<8x32xf32> to vector<8x8xf32>
    %100 = vector.extract_strided_slice %43 {offsets = [0, 24], sizes = [8, 8], strides = [1, 1]} : vector<8x32xf32> to vector<8x8xf32>
    %101 = vector.extract_strided_slice %50 {offsets = [0, 24], sizes = [8, 8], strides = [1, 1]} : vector<8x32xf32> to vector<8x8xf32>
    %cst_49 = arith.constant dense<0.000000e+00> : vector<8x8xf32>
    %102 = tpu.matmul %99, %100, %cst_49 {dimension_numbers = #tpu.dot_dimension_numbers<[1], [1], [0], [0], [0, 0, 1, 0], [], []>} : vector<8x8xf32>, vector<8x8xf32>, vector<8x8xf32> -> vector<8x8xf32>
    %cst_50 = arith.constant 0.353553385 : f32
    %103 = vector.broadcast %cst_50 : f32 to vector<8x8xf32>
    %104 = arith.mulf %102, %103 : vector<8x8xf32>
    %cst_51 = arith.constant dense<0xFF800000> : vector<8xf32>
    %105 = vector.multi_reduction <maximumf>, %104, %cst_51 [1] : vector<8x8xf32> to vector<8xf32>
    %106 = vector.shape_cast %105 : vector<8xf32> to vector<8x1xf32>
    %107 = vector.broadcast %106 : vector<8x1xf32> to vector<8x8xf32>
    %108 = arith.subf %104, %107 : vector<8x8xf32>
    %109 = math.exp %108 : vector<8x8xf32>
    %cst_52 = arith.constant dense<0.000000e+00> : vector<8xf32>
    %110 = vector.multi_reduction <add>, %109, %cst_52 [1] : vector<8x8xf32> to vector<8xf32>
    %111 = vector.shape_cast %110 : vector<8xf32> to vector<8x1xf32>
    %112 = vector.broadcast %111 : vector<8x1xf32> to vector<8x8xf32>
    %113 = arith.divf %109, %112 : vector<8x8xf32>
    %cst_53 = arith.constant dense<0.000000e+00> : vector<8x8xf32>
    %114 = tpu.matmul %113, %101, %cst_53 {dimension_numbers = #tpu.dot_dimension_numbers<[1], [0], [0], [1], [0, 0, 1, 1], [], []>} : vector<8x8xf32>, vector<8x8xf32>, vector<8x8xf32> -> vector<8x8xf32>
    %115 = tpu.concatenate %66, %82, %98, %114 in 1 : vector<8x8xf32>, vector<8x8xf32>, vector<8x8xf32>, vector<8x8xf32> -> vector<8x32xf32>
    %c3 = arith.constant 3 : index
    %c0_54 = arith.constant 0 : index
    %c0_55 = arith.constant 0 : index
    %116 = vector.load %arg3[%c3, %c0_54, %c0_55] : memref<8x32x32xf32, #tpu.memory_space<vmem>>, vector<1x32x32xf32>
    %117 = vector.shape_cast %116 : vector<1x32x32xf32> to vector<32x32xf32>
    %cst_56 = arith.constant dense<0.000000e+00> : vector<8x32xf32>
    %118 = tpu.matmul %115, %117, %cst_56 {dimension_numbers = #tpu.dot_dimension_numbers<[1], [0], [0], [1], [0, 0, 1, 1], [], []>} : vector<8x32xf32>, vector<32x32xf32>, vector<8x32xf32> -> vector<8x32xf32>
    %c3_57 = arith.constant 3 : index
    %c0_58 = arith.constant 0 : index
    %c0_59 = arith.constant 0 : index
    %119 = vector.load %arg4[%c3_57, %c0_58, %c0_59] : memref<8x1x32xf32, #tpu.memory_space<vmem>>, vector<1x1x32xf32>
    %120 = vector.shape_cast %119 : vector<1x1x32xf32> to vector<1x32xf32>
    %121 = vector.broadcast %120 : vector<1x32xf32> to vector<8x32xf32>
    %122 = arith.addf %118, %121 : vector<8x32xf32>
    %123 = arith.addf %1, %122 : vector<8x32xf32>
    %c2_60 = arith.constant 2 : index
    %c0_61 = arith.constant 0 : index
    %c0_62 = arith.constant 0 : index
    %124 = vector.load %arg5[%c2_60, %c0_61, %c0_62] : memref<6x1x32xf32, #tpu.memory_space<vmem>>, vector<1x1x32xf32>
    %125 = vector.shape_cast %124 : vector<1x1x32xf32> to vector<1x32xf32>
    %c3_63 = arith.constant 3 : index
    %c0_64 = arith.constant 0 : index
    %c0_65 = arith.constant 0 : index
    %126 = vector.load %arg5[%c3_63, %c0_64, %c0_65] : memref<6x1x32xf32, #tpu.memory_space<vmem>>, vector<1x1x32xf32>
    %127 = vector.shape_cast %126 : vector<1x1x32xf32> to vector<1x32xf32>
    %cst_66 = arith.constant dense<0.000000e+00> : vector<8xf32>
    %128 = vector.multi_reduction <add>, %123, %cst_66 [1] : vector<8x32xf32> to vector<8xf32>
    %129 = vector.shape_cast %128 : vector<8xf32> to vector<8x1xf32>
    %cst_67 = arith.constant 3.200000e+01 : f32
    %130 = vector.broadcast %cst_67 : f32 to vector<8x1xf32>
    %131 = arith.divf %129, %130 : vector<8x1xf32>
    %132 = vector.broadcast %131 : vector<8x1xf32> to vector<8x32xf32>
    %133 = arith.subf %123, %132 : vector<8x32xf32>
    %134 = arith.mulf %133, %133 : vector<8x32xf32>
    %cst_68 = arith.constant dense<0.000000e+00> : vector<8xf32>
    %135 = vector.multi_reduction <add>, %134, %cst_68 [1] : vector<8x32xf32> to vector<8xf32>
    %136 = vector.shape_cast %135 : vector<8xf32> to vector<8x1xf32>
    %cst_69 = arith.constant 3.200000e+01 : f32
    %137 = vector.broadcast %cst_69 : f32 to vector<8x1xf32>
    %138 = arith.divf %136, %137 : vector<8x1xf32>
    %139 = vector.broadcast %131 : vector<8x1xf32> to vector<8x32xf32>
    %140 = arith.subf %123, %139 : vector<8x32xf32>
    %cst_70 = arith.constant 9.99999974E-6 : f32
    %141 = vector.broadcast %cst_70 : f32 to vector<8x1xf32>
    %142 = arith.addf %138, %141 : vector<8x1xf32>
    %143 = math.rsqrt %142 : vector<8x1xf32>
    %144 = vector.broadcast %143 : vector<8x1xf32> to vector<8x32xf32>
    %145 = arith.mulf %140, %144 : vector<8x32xf32>
    %146 = vector.broadcast %125 : vector<1x32xf32> to vector<8x32xf32>
    %147 = arith.mulf %145, %146 : vector<8x32xf32>
    %148 = vector.broadcast %127 : vector<1x32xf32> to vector<8x32xf32>
    %149 = arith.addf %147, %148 : vector<8x32xf32>
    %c4 = arith.constant 4 : index
    %c0_71 = arith.constant 0 : index
    %c0_72 = arith.constant 0 : index
    %150 = vector.load %arg3[%c4, %c0_71, %c0_72] : memref<8x32x32xf32, #tpu.memory_space<vmem>>, vector<1x32x32xf32>
    %151 = vector.shape_cast %150 : vector<1x32x32xf32> to vector<32x32xf32>
    %cst_73 = arith.constant dense<0.000000e+00> : vector<8x32xf32>
    %152 = tpu.matmul %149, %151, %cst_73 {dimension_numbers = #tpu.dot_dimension_numbers<[1], [0], [0], [1], [0, 0, 1, 1], [], []>} : vector<8x32xf32>, vector<32x32xf32>, vector<8x32xf32> -> vector<8x32xf32>
    %c4_74 = arith.constant 4 : index
    %c0_75 = arith.constant 0 : index
    %c0_76 = arith.constant 0 : index
    %153 = vector.load %arg4[%c4_74, %c0_75, %c0_76] : memref<8x1x32xf32, #tpu.memory_space<vmem>>, vector<1x1x32xf32>
    %154 = vector.shape_cast %153 : vector<1x1x32xf32> to vector<1x32xf32>
    %155 = vector.broadcast %154 : vector<1x32xf32> to vector<8x32xf32>
    %156 = arith.addf %152, %155 : vector<8x32xf32>
    %c5 = arith.constant 5 : index
    %c0_77 = arith.constant 0 : index
    %c0_78 = arith.constant 0 : index
    %157 = vector.load %arg3[%c5, %c0_77, %c0_78] : memref<8x32x32xf32, #tpu.memory_space<vmem>>, vector<1x32x32xf32>
    %158 = vector.shape_cast %157 : vector<1x32x32xf32> to vector<32x32xf32>
    %cst_79 = arith.constant dense<0.000000e+00> : vector<16x32xf32>
    %159 = tpu.matmul %3, %158, %cst_79 {dimension_numbers = #tpu.dot_dimension_numbers<[1], [0], [0], [1], [0, 0, 1, 1], [], []>} : vector<16x32xf32>, vector<32x32xf32>, vector<16x32xf32> -> vector<16x32xf32>
    %c5_80 = arith.constant 5 : index
    %c0_81 = arith.constant 0 : index
    %c0_82 = arith.constant 0 : index
    %160 = vector.load %arg4[%c5_80, %c0_81, %c0_82] : memref<8x1x32xf32, #tpu.memory_space<vmem>>, vector<1x1x32xf32>
    %161 = vector.shape_cast %160 : vector<1x1x32xf32> to vector<1x32xf32>
    %162 = vector.broadcast %161 : vector<1x32xf32> to vector<16x32xf32>
    %163 = arith.addf %159, %162 : vector<16x32xf32>
    %c6 = arith.constant 6 : index
    %c0_83 = arith.constant 0 : index
    %c0_84 = arith.constant 0 : index
    %164 = vector.load %arg3[%c6, %c0_83, %c0_84] : memref<8x32x32xf32, #tpu.memory_space<vmem>>, vector<1x32x32xf32>
    %165 = vector.shape_cast %164 : vector<1x32x32xf32> to vector<32x32xf32>
    %cst_85 = arith.constant dense<0.000000e+00> : vector<16x32xf32>
    %166 = tpu.matmul %3, %165, %cst_85 {dimension_numbers = #tpu.dot_dimension_numbers<[1], [0], [0], [1], [0, 0, 1, 1], [], []>} : vector<16x32xf32>, vector<32x32xf32>, vector<16x32xf32> -> vector<16x32xf32>
    %c6_86 = arith.constant 6 : index
    %c0_87 = arith.constant 0 : index
    %c0_88 = arith.constant 0 : index
    %167 = vector.load %arg4[%c6_86, %c0_87, %c0_88] : memref<8x1x32xf32, #tpu.memory_space<vmem>>, vector<1x1x32xf32>
    %168 = vector.shape_cast %167 : vector<1x1x32xf32> to vector<1x32xf32>
    %169 = vector.broadcast %168 : vector<1x32xf32> to vector<16x32xf32>
    %170 = arith.addf %166, %169 : vector<16x32xf32>
    %171 = vector.extract_strided_slice %156 {offsets = [0, 0], sizes = [8, 8], strides = [1, 1]} : vector<8x32xf32> to vector<8x8xf32>
    %172 = vector.extract_strided_slice %163 {offsets = [0, 0], sizes = [16, 8], strides = [1, 1]} : vector<16x32xf32> to vector<16x8xf32>
    %173 = vector.extract_strided_slice %170 {offsets = [0, 0], sizes = [16, 8], strides = [1, 1]} : vector<16x32xf32> to vector<16x8xf32>
    %cst_89 = arith.constant dense<0.000000e+00> : vector<8x16xf32>
    %174 = tpu.matmul %171, %172, %cst_89 {dimension_numbers = #tpu.dot_dimension_numbers<[1], [1], [0], [0], [0, 0, 1, 0], [], []>} : vector<8x8xf32>, vector<16x8xf32>, vector<8x16xf32> -> vector<8x16xf32>
    %cst_90 = arith.constant 0.353553385 : f32
    %175 = vector.broadcast %cst_90 : f32 to vector<8x16xf32>
    %176 = arith.mulf %174, %175 : vector<8x16xf32>
    %cst_91 = arith.constant dense<0xFF800000> : vector<8xf32>
    %177 = vector.multi_reduction <maximumf>, %176, %cst_91 [1] : vector<8x16xf32> to vector<8xf32>
    %178 = vector.shape_cast %177 : vector<8xf32> to vector<8x1xf32>
    %179 = vector.broadcast %178 : vector<8x1xf32> to vector<8x16xf32>
    %180 = arith.subf %176, %179 : vector<8x16xf32>
    %181 = math.exp %180 : vector<8x16xf32>
    %cst_92 = arith.constant dense<0.000000e+00> : vector<8xf32>
    %182 = vector.multi_reduction <add>, %181, %cst_92 [1] : vector<8x16xf32> to vector<8xf32>
    %183 = vector.shape_cast %182 : vector<8xf32> to vector<8x1xf32>
    %184 = vector.broadcast %183 : vector<8x1xf32> to vector<8x16xf32>
    %185 = arith.divf %181, %184 : vector<8x16xf32>
    %cst_93 = arith.constant dense<0.000000e+00> : vector<8x8xf32>
    %186 = tpu.matmul %185, %173, %cst_93 {dimension_numbers = #tpu.dot_dimension_numbers<[1], [0], [0], [1], [0, 0, 1, 1], [], []>} : vector<8x16xf32>, vector<16x8xf32>, vector<8x8xf32> -> vector<8x8xf32>
    %187 = vector.extract_strided_slice %156 {offsets = [0, 8], sizes = [8, 8], strides = [1, 1]} : vector<8x32xf32> to vector<8x8xf32>
    %188 = vector.extract_strided_slice %163 {offsets = [0, 8], sizes = [16, 8], strides = [1, 1]} : vector<16x32xf32> to vector<16x8xf32>
    %189 = vector.extract_strided_slice %170 {offsets = [0, 8], sizes = [16, 8], strides = [1, 1]} : vector<16x32xf32> to vector<16x8xf32>
    %cst_94 = arith.constant dense<0.000000e+00> : vector<8x16xf32>
    %190 = tpu.matmul %187, %188, %cst_94 {dimension_numbers = #tpu.dot_dimension_numbers<[1], [1], [0], [0], [0, 0, 1, 0], [], []>} : vector<8x8xf32>, vector<16x8xf32>, vector<8x16xf32> -> vector<8x16xf32>
    %cst_95 = arith.constant 0.353553385 : f32
    %191 = vector.broadcast %cst_95 : f32 to vector<8x16xf32>
    %192 = arith.mulf %190, %191 : vector<8x16xf32>
    %cst_96 = arith.constant dense<0xFF800000> : vector<8xf32>
    %193 = vector.multi_reduction <maximumf>, %192, %cst_96 [1] : vector<8x16xf32> to vector<8xf32>
    %194 = vector.shape_cast %193 : vector<8xf32> to vector<8x1xf32>
    %195 = vector.broadcast %194 : vector<8x1xf32> to vector<8x16xf32>
    %196 = arith.subf %192, %195 : vector<8x16xf32>
    %197 = math.exp %196 : vector<8x16xf32>
    %cst_97 = arith.constant dense<0.000000e+00> : vector<8xf32>
    %198 = vector.multi_reduction <add>, %197, %cst_97 [1] : vector<8x16xf32> to vector<8xf32>
    %199 = vector.shape_cast %198 : vector<8xf32> to vector<8x1xf32>
    %200 = vector.broadcast %199 : vector<8x1xf32> to vector<8x16xf32>
    %201 = arith.divf %197, %200 : vector<8x16xf32>
    %cst_98 = arith.constant dense<0.000000e+00> : vector<8x8xf32>
    %202 = tpu.matmul %201, %189, %cst_98 {dimension_numbers = #tpu.dot_dimension_numbers<[1], [0], [0], [1], [0, 0, 1, 1], [], []>} : vector<8x16xf32>, vector<16x8xf32>, vector<8x8xf32> -> vector<8x8xf32>
    %203 = vector.extract_strided_slice %156 {offsets = [0, 16], sizes = [8, 8], strides = [1, 1]} : vector<8x32xf32> to vector<8x8xf32>
    %204 = vector.extract_strided_slice %163 {offsets = [0, 16], sizes = [16, 8], strides = [1, 1]} : vector<16x32xf32> to vector<16x8xf32>
    %205 = vector.extract_strided_slice %170 {offsets = [0, 16], sizes = [16, 8], strides = [1, 1]} : vector<16x32xf32> to vector<16x8xf32>
    %cst_99 = arith.constant dense<0.000000e+00> : vector<8x16xf32>
    %206 = tpu.matmul %203, %204, %cst_99 {dimension_numbers = #tpu.dot_dimension_numbers<[1], [1], [0], [0], [0, 0, 1, 0], [], []>} : vector<8x8xf32>, vector<16x8xf32>, vector<8x16xf32> -> vector<8x16xf32>
    %cst_100 = arith.constant 0.353553385 : f32
    %207 = vector.broadcast %cst_100 : f32 to vector<8x16xf32>
    %208 = arith.mulf %206, %207 : vector<8x16xf32>
    %cst_101 = arith.constant dense<0xFF800000> : vector<8xf32>
    %209 = vector.multi_reduction <maximumf>, %208, %cst_101 [1] : vector<8x16xf32> to vector<8xf32>
    %210 = vector.shape_cast %209 : vector<8xf32> to vector<8x1xf32>
    %211 = vector.broadcast %210 : vector<8x1xf32> to vector<8x16xf32>
    %212 = arith.subf %208, %211 : vector<8x16xf32>
    %213 = math.exp %212 : vector<8x16xf32>
    %cst_102 = arith.constant dense<0.000000e+00> : vector<8xf32>
    %214 = vector.multi_reduction <add>, %213, %cst_102 [1] : vector<8x16xf32> to vector<8xf32>
    %215 = vector.shape_cast %214 : vector<8xf32> to vector<8x1xf32>
    %216 = vector.broadcast %215 : vector<8x1xf32> to vector<8x16xf32>
    %217 = arith.divf %213, %216 : vector<8x16xf32>
    %cst_103 = arith.constant dense<0.000000e+00> : vector<8x8xf32>
    %218 = tpu.matmul %217, %205, %cst_103 {dimension_numbers = #tpu.dot_dimension_numbers<[1], [0], [0], [1], [0, 0, 1, 1], [], []>} : vector<8x16xf32>, vector<16x8xf32>, vector<8x8xf32> -> vector<8x8xf32>
    %219 = vector.extract_strided_slice %156 {offsets = [0, 24], sizes = [8, 8], strides = [1, 1]} : vector<8x32xf32> to vector<8x8xf32>
    %220 = vector.extract_strided_slice %163 {offsets = [0, 24], sizes = [16, 8], strides = [1, 1]} : vector<16x32xf32> to vector<16x8xf32>
    %221 = vector.extract_strided_slice %170 {offsets = [0, 24], sizes = [16, 8], strides = [1, 1]} : vector<16x32xf32> to vector<16x8xf32>
    %cst_104 = arith.constant dense<0.000000e+00> : vector<8x16xf32>
    %222 = tpu.matmul %219, %220, %cst_104 {dimension_numbers = #tpu.dot_dimension_numbers<[1], [1], [0], [0], [0, 0, 1, 0], [], []>} : vector<8x8xf32>, vector<16x8xf32>, vector<8x16xf32> -> vector<8x16xf32>
    %cst_105 = arith.constant 0.353553385 : f32
    %223 = vector.broadcast %cst_105 : f32 to vector<8x16xf32>
    %224 = arith.mulf %222, %223 : vector<8x16xf32>
    %cst_106 = arith.constant dense<0xFF800000> : vector<8xf32>
    %225 = vector.multi_reduction <maximumf>, %224, %cst_106 [1] : vector<8x16xf32> to vector<8xf32>
    %226 = vector.shape_cast %225 : vector<8xf32> to vector<8x1xf32>
    %227 = vector.broadcast %226 : vector<8x1xf32> to vector<8x16xf32>
    %228 = arith.subf %224, %227 : vector<8x16xf32>
    %229 = math.exp %228 : vector<8x16xf32>
    %cst_107 = arith.constant dense<0.000000e+00> : vector<8xf32>
    %230 = vector.multi_reduction <add>, %229, %cst_107 [1] : vector<8x16xf32> to vector<8xf32>
    %231 = vector.shape_cast %230 : vector<8xf32> to vector<8x1xf32>
    %232 = vector.broadcast %231 : vector<8x1xf32> to vector<8x16xf32>
    %233 = arith.divf %229, %232 : vector<8x16xf32>
    %cst_108 = arith.constant dense<0.000000e+00> : vector<8x8xf32>
    %234 = tpu.matmul %233, %221, %cst_108 {dimension_numbers = #tpu.dot_dimension_numbers<[1], [0], [0], [1], [0, 0, 1, 1], [], []>} : vector<8x16xf32>, vector<16x8xf32>, vector<8x8xf32> -> vector<8x8xf32>
    %235 = tpu.concatenate %186, %202, %218, %234 in 1 : vector<8x8xf32>, vector<8x8xf32>, vector<8x8xf32>, vector<8x8xf32> -> vector<8x32xf32>
    %c7 = arith.constant 7 : index
    %c0_109 = arith.constant 0 : index
    %c0_110 = arith.constant 0 : index
    %236 = vector.load %arg3[%c7, %c0_109, %c0_110] : memref<8x32x32xf32, #tpu.memory_space<vmem>>, vector<1x32x32xf32>
    %237 = vector.shape_cast %236 : vector<1x32x32xf32> to vector<32x32xf32>
    %cst_111 = arith.constant dense<0.000000e+00> : vector<8x32xf32>
    %238 = tpu.matmul %235, %237, %cst_111 {dimension_numbers = #tpu.dot_dimension_numbers<[1], [0], [0], [1], [0, 0, 1, 1], [], []>} : vector<8x32xf32>, vector<32x32xf32>, vector<8x32xf32> -> vector<8x32xf32>
    %c7_112 = arith.constant 7 : index
    %c0_113 = arith.constant 0 : index
    %c0_114 = arith.constant 0 : index
    %239 = vector.load %arg4[%c7_112, %c0_113, %c0_114] : memref<8x1x32xf32, #tpu.memory_space<vmem>>, vector<1x1x32xf32>
    %240 = vector.shape_cast %239 : vector<1x1x32xf32> to vector<1x32xf32>
    %241 = vector.broadcast %240 : vector<1x32xf32> to vector<8x32xf32>
    %242 = arith.addf %238, %241 : vector<8x32xf32>
    %243 = arith.addf %123, %242 : vector<8x32xf32>
    %c4_115 = arith.constant 4 : index
    %c0_116 = arith.constant 0 : index
    %c0_117 = arith.constant 0 : index
    %244 = vector.load %arg5[%c4_115, %c0_116, %c0_117] : memref<6x1x32xf32, #tpu.memory_space<vmem>>, vector<1x1x32xf32>
    %245 = vector.shape_cast %244 : vector<1x1x32xf32> to vector<1x32xf32>
    %c5_118 = arith.constant 5 : index
    %c0_119 = arith.constant 0 : index
    %c0_120 = arith.constant 0 : index
    %246 = vector.load %arg5[%c5_118, %c0_119, %c0_120] : memref<6x1x32xf32, #tpu.memory_space<vmem>>, vector<1x1x32xf32>
    %247 = vector.shape_cast %246 : vector<1x1x32xf32> to vector<1x32xf32>
    %cst_121 = arith.constant dense<0.000000e+00> : vector<8xf32>
    %248 = vector.multi_reduction <add>, %243, %cst_121 [1] : vector<8x32xf32> to vector<8xf32>
    %249 = vector.shape_cast %248 : vector<8xf32> to vector<8x1xf32>
    %cst_122 = arith.constant 3.200000e+01 : f32
    %250 = vector.broadcast %cst_122 : f32 to vector<8x1xf32>
    %251 = arith.divf %249, %250 : vector<8x1xf32>
    %252 = vector.broadcast %251 : vector<8x1xf32> to vector<8x32xf32>
    %253 = arith.subf %243, %252 : vector<8x32xf32>
    %254 = arith.mulf %253, %253 : vector<8x32xf32>
    %cst_123 = arith.constant dense<0.000000e+00> : vector<8xf32>
    %255 = vector.multi_reduction <add>, %254, %cst_123 [1] : vector<8x32xf32> to vector<8xf32>
    %256 = vector.shape_cast %255 : vector<8xf32> to vector<8x1xf32>
    %cst_124 = arith.constant 3.200000e+01 : f32
    %257 = vector.broadcast %cst_124 : f32 to vector<8x1xf32>
    %258 = arith.divf %256, %257 : vector<8x1xf32>
    %259 = vector.broadcast %251 : vector<8x1xf32> to vector<8x32xf32>
    %260 = arith.subf %243, %259 : vector<8x32xf32>
    %cst_125 = arith.constant 9.99999974E-6 : f32
    %261 = vector.broadcast %cst_125 : f32 to vector<8x1xf32>
    %262 = arith.addf %258, %261 : vector<8x1xf32>
    %263 = math.rsqrt %262 : vector<8x1xf32>
    %264 = vector.broadcast %263 : vector<8x1xf32> to vector<8x32xf32>
    %265 = arith.mulf %260, %264 : vector<8x32xf32>
    %266 = vector.broadcast %245 : vector<1x32xf32> to vector<8x32xf32>
    %267 = arith.mulf %265, %266 : vector<8x32xf32>
    %268 = vector.broadcast %247 : vector<1x32xf32> to vector<8x32xf32>
    %269 = arith.addf %267, %268 : vector<8x32xf32>
    %c0_126 = arith.constant 0 : index
    %c0_127 = arith.constant 0 : index
    %270 = vector.load %arg6[%c0_126, %c0_127] : memref<32x64xf32, #tpu.memory_space<vmem>>, vector<32x64xf32>
    %cst_128 = arith.constant dense<0.000000e+00> : vector<8x64xf32>
    %271 = tpu.matmul %269, %270, %cst_128 {dimension_numbers = #tpu.dot_dimension_numbers<[1], [0], [0], [1], [0, 0, 1, 1], [], []>} : vector<8x32xf32>, vector<32x64xf32>, vector<8x64xf32> -> vector<8x64xf32>
    %c0_129 = arith.constant 0 : index
    %c0_130 = arith.constant 0 : index
    %272 = vector.load %arg7[%c0_129, %c0_130] : memref<1x64xf32, #tpu.memory_space<vmem>>, vector<1x64xf32>
    %273 = vector.broadcast %272 : vector<1x64xf32> to vector<8x64xf32>
    %274 = arith.addf %271, %273 : vector<8x64xf32>
    %cst_131 = arith.constant 0.000000e+00 : f32
    %275 = vector.broadcast %cst_131 : f32 to vector<8x64xf32>
    %276 = arith.maximumf %274, %275 : vector<8x64xf32>
    %c0_132 = arith.constant 0 : index
    %c0_133 = arith.constant 0 : index
    %277 = vector.load %arg8[%c0_132, %c0_133] : memref<64x32xf32, #tpu.memory_space<vmem>>, vector<64x32xf32>
    %cst_134 = arith.constant dense<0.000000e+00> : vector<8x32xf32>
    %278 = tpu.matmul %276, %277, %cst_134 {dimension_numbers = #tpu.dot_dimension_numbers<[1], [0], [0], [1], [0, 0, 1, 1], [], []>} : vector<8x64xf32>, vector<64x32xf32>, vector<8x32xf32> -> vector<8x32xf32>
    %c0_135 = arith.constant 0 : index
    %c0_136 = arith.constant 0 : index
    %279 = vector.load %arg9[%c0_135, %c0_136] : memref<1x32xf32, #tpu.memory_space<vmem>>, vector<1x32xf32>
    %280 = vector.broadcast %279 : vector<1x32xf32> to vector<8x32xf32>
    %281 = arith.addf %278, %280 : vector<8x32xf32>
    %282 = arith.addf %281, %243 : vector<8x32xf32>
    %283 = arith.addf %243, %282 : vector<8x32xf32>
    %c0_137 = arith.constant 0 : index
    %c0_138 = arith.constant 0 : index
    %c0_139 = arith.constant 0 : index
    %284 = vector.load %arg10[%c0_137, %c0_138, %c0_139] : memref<1x8x32xf32, #tpu.memory_space<vmem>>, vector<1x8x32xf32>
    %285 = vector.shape_cast %284 : vector<1x8x32xf32> to vector<8x32xf32>
    %286 = vector.shape_cast %283 : vector<8x32xf32> to vector<1x8x32xf32>
    tpu.vector_store %arg10[%c0_137, %c0_138, %c0_139], %286 {strides = array<i32>} : memref<1x8x32xf32, #tpu.memory_space<vmem>>, vector<1x8x32xf32>,
    return
  }
  func.func @transform_0(%arg0: i32) -> (i32, i32, i32) {
    %c0_i32 = arith.constant 0 : i32
    %c0_i32_0 = arith.constant 0 : i32
    %c0_i32_1 = arith.constant 0 : i32
    return %arg0, %c0_i32, %c0_i32_0 : i32, i32, i32
  }
  func.func @transform_1(%arg0: i32) -> (i32, i32, i32) {
    %c0_i32 = arith.constant 0 : i32
    %c0_i32_0 = arith.constant 0 : i32
    %c0_i32_1 = arith.constant 0 : i32
    return %arg0, %c0_i32, %c0_i32_0 : i32, i32, i32
  }
  func.func @transform_2(%arg0: i32) -> (i32, i32, i32) {
    %c0_i32 = arith.constant 0 : i32
    %c0_i32_0 = arith.constant 0 : i32
    %c0_i32_1 = arith.constant 0 : i32
    %c0_i32_2 = arith.constant 0 : i32
    return %c0_i32, %c0_i32_0, %c0_i32_1 : i32, i32, i32
  }
  func.func @transform_3(%arg0: i32) -> (i32, i32, i32) {
    %c0_i32 = arith.constant 0 : i32
    %c0_i32_0 = arith.constant 0 : i32
    %c0_i32_1 = arith.constant 0 : i32
    %c0_i32_2 = arith.constant 0 : i32
    return %c0_i32, %c0_i32_0, %c0_i32_1 : i32, i32, i32
  }
  func.func @transform_4(%arg0: i32) -> (i32, i32, i32) {
    %c0_i32 = arith.constant 0 : i32
    %c0_i32_0 = arith.constant 0 : i32
    %c0_i32_1 = arith.constant 0 : i32
    %c0_i32_2 = arith.constant 0 : i32
    return %c0_i32, %c0_i32_0, %c0_i32_1 : i32, i32, i32
  }
  func.func @transform_5(%arg0: i32) -> (i32, i32) {
    %c0_i32 = arith.constant 0 : i32
    %c0_i32_0 = arith.constant 0 : i32
    %c0_i32_1 = arith.constant 0 : i32
    return %c0_i32, %c0_i32_0 : i32, i32
  }
  func.func @transform_6(%arg0: i32) -> (i32, i32) {
    %c0_i32 = arith.constant 0 : i32
    %c0_i32_0 = arith.constant 0 : i32
    %c0_i32_1 = arith.constant 0 : i32
    return %c0_i32, %c0_i32_0 : i32, i32
  }
  func.func @transform_7(%arg0: i32) -> (i32, i32) {
    %c0_i32 = arith.constant 0 : i32
    %c0_i32_0 = arith.constant 0 : i32
    %c0_i32_1 = arith.constant 0 : i32
    return %c0_i32, %c0_i32_0 : i32, i32
  }
  func.func @transform_8(%arg0: i32) -> (i32, i32) {
    %c0_i32 = arith.constant 0 : i32
    %c0_i32_0 = arith.constant 0 : i32
    %c0_i32_1 = arith.constant 0 : i32
    return %c0_i32, %c0_i32_0 : i32, i32
  }
  func.func @transform_9(%arg0: i32) -> (i32, i32, i32) {
    %c0_i32 = arith.constant 0 : i32
    %c0_i32_0 = arith.constant 0 : i32
    %c0_i32_1 = arith.constant 0 : i32
    return %arg0, %c0_i32, %c0_i32_0 : i32, i32, i32
  }
}

</mosaic_0001>

<bundles_post_ra>
// kernel: tpu_custom_call.1
= control target key start
LH: loop header
LB: loop body
LE: loop exit
PB: predicated region body
PF: predicated region fallthrough
CT: control target
= control target key end

     0   :  { %14 = vsyncpa [#allocation3], 0  ;;  %s2286_s0 = inlined_call_operand.vmem [shape: f32[2,8,32], index: 0, kind: input, shape index: {}]   ;;  %s2287_s1 = inlined_call_operand.vmem [shape: f32[2,16,32], index: 1, kind: input, shape index: {}]   ;;  %s2288_s2 = inlined_call_operand.hbm [shape: f32[8,32,32], index: 2, kind: input, shape index: {}]   ;;  %s2289_s3 = inlined_call_operand.vmem [shape: f32[8,1,32], index: 3, kind: input, shape index: {}]   ;;  %s2290_s4 = inlined_call_operand.vmem [shape: f32[6,1,32], index: 4, kind: input, shape index: {}]   ;;  %s2291_s5 = inlined_call_operand.vmem [shape: f32[32,64], index: 5, kind: input, shape index: {}]   ;;  %s2292_s6 = inlined_call_operand.vmem [shape: f32[1,64], index: 6, kind: input, shape index: {}]   ;;  %s2293_s7 = inlined_call_operand.vmem [shape: f32[64,32], index: 7, kind: input, shape index: {}]   ;;  %s2294_s8 = inlined_call_operand.vmem [shape: f32[1,32], index: 8, kind: input, shape index: {}]   ;;  %s2295_s9 = inlined_call_operand.hbm [shape: f32[2,8,32], index: 9, kind: output, shape index: {}]  }
   0x1   :  { %15 = vsyncpa [#allocation4], 0 }
   0x2   :  { %17 = vsyncpa [#allocation4 + $0x1], 0  ;;  %s1948_s30 = smov 0   ;;  %s1950_s10 = smov 0  }
   0x3   :  { %s1952_s11 = smov 0   ;;  %s1954_s12 = smov 0  }
   0x4 LB: > { %s1969_s13 = sadd.s32 4294967295, %s1886_s12   ;;  %s1593_s14 = sadd.s32 4294967294, %s1886_s12   ;;  %s1886_s12 = sphi %s1954_s12, %s2303_s12   ;;  %s1882_s11 = sphi %s1952_s11, %s2302_s11   ;;  %s1878_s10 = sphi %s1950_s10, %s2301_s10   ;;  %s1874_s30 = sphi %s1948_s30, %s2300_s30  }
   0x5   : > { %s1973_s15 = sadd.s32 1, %s1886_s12   ;;  %s229_s16 = sadd.s32 1, %s1882_s11 }
   0x6   : > { %s226_s17 = ssub.s32 %s1886_s12, %s1973_s15  ;;  %p239_p0 = scmp.ne.s32.totalorder %s1882_s11, %s1878_s10 }
   0x7   : > { %p227_p1 = scmp.eq.s32.totalorder %s226_s17, 0  ;;  %p240_p2 = scmp.eq.s32.totalorder %s1969_s13, 1 }
   0x8   : > { %p245_p3 = scmp.ne.s32.totalorder %s1878_s10, %s1874_s30  ;;  %p246_p4 = scmp.eq.s32.totalorder %s1593_s14, 1 }
   0x9   : > { %s1984_s18 = scalar_select %p227_p1, %s1882_s11, %s229_s16  }
   0xa   : > { %p1986_p5 = por %p240_p2, %p239_p0  ;;  %p1990_p6 = por %p246_p4, %p245_p3 }
   0xb   : > { %p1594_p7 = scmp.ge.s32.totalorder %s1886_s12, 1  ;;  %p253_p8 = scmp.lt.s32.totalorder %s1886_s12, 3 }
   0xc   : > { %p1674_p9 = scmp.eq.s32.totalorder %s1969_s13, 0  ;;  %s264_s23 = sshll.u32 %s2288_s2, 4  ;;  %s265_s23 = int_to_ptr.hbm [resolvable:$true] %s264_s23 }
   0xd   : > { %p254_p10 = pnand %p1594_p7, %p253_p8  ;;  %s1888_s24 = smov [#allocation2]  }
   0xe   : > { %s266_s25 = sshll.u32 %s1888_s24, 4  ;;  %s1889_s26 = smov 128   ;;  %s267_s25 = int_to_ptr.vmem [resolvable:$true] %s266_s25 }
   0xf   : > { %p1666_p11 = pneg %p254_p10  ;;  %s1890_s27 = smov 8  }
  0x10   : > { %315 = sbr.rel (%p254_p10) target bundleno = 3440 (0xd70), region = 56 }
  0x11   : > { %p1667_p12 = pnand %p1674_p9, %p1666_p11 }
  0x13   : > { %1669 = dma.hbm_to_vmem [thread:$0]  (!%p1667_p12), %s265_s23, 4096, %s267_s25, [#allocation3], %s1889_s26, %s1889_s26, %s1890_s27  }
  0x15   : > { %1865 = dma.done.wait (%p1674_p9), [#allocation3], 4096  }
  0x16   : > { %1867 = vsyncadd (%p1674_p9), [#allocation3], 4294963200  ;;  %p356_p13 = scmp.lt.s32.totalorder %s1969_s13, 1  ;;  %vm371_vm0 = vcmask 261120   ;;  %v1891_v2 = vmov 32.0   ;;  %v412_v14 = vld [vmem:[#allocation2 + $0x18] sm:$0xff] }
  0x17   : > { %1750 = vrcp.f32 %v1891_v2  ;;  %v444_v15 = vld [vmem:[#allocation2 + $0x38] sm:$0xff]  ;;  %432 = vmatpush.msra.mxu0 %v412_v14  ;;  %v411_v17 = vld [vmem:[#allocation2 + $0x10] sm:$0xff]  ;;  %v410_v20 = vld [vmem:[#allocation2 + $0x8] sm:$0xff]  ;;  %vm500_vm5 = vcmask 64512   ;;  %s1892_s14 = smov 120   ;;  %s1893_s16 = smov 112  }
  0x18   : > { %s2008_s28 = scalar_select %p356_p13, %s1969_s13, 1  ;;  %v474_v16 = vld [vmem:[#allocation2 + $0x58] sm:$0xff]  ;;  %462 = vmatpush.msra.mxu1 %v444_v15  ;;  %v443_v18 = vld [vmem:[#allocation2 + $0x30] sm:$0xff]  ;;  %v442_v21 = vld [vmem:[#allocation2 + $0x28] sm:$0xff] }
  0x19   : > { %v473_v19 = vld [vmem:[#allocation2 + $0x50] sm:$0xff]  ;;  %492 = vmatpush.msra.mxu2 %v474_v16  ;;  %433 = vmatpush.msra.mxu0 %v411_v17  ;;  %v472_v22 = vld [vmem:[#allocation2 + $0x48] sm:$0xff]  ;;  %v409_v23 = vld [vmem:[#allocation2] sm:$0xff]  ;;  %s1894_s22 = smov 104   ;;  %s1895_s23 = smov 8  }
  0x1a   : > { %s1600_s29 = sshll.u32 %s2008_s28, 3  ;;  %463 = vmatpush.msra.mxu1 %v443_v18  ;;  %v441_v24 = vld [vmem:[#allocation2 + $0x20] sm:$0xff]  ;;  %s2296_s24 = smov 24  }
  0x1b   : > { %s359_s17 = scalar_lea.vmem %s2286_s0, %s1600_s29  ;;  %493 = vmatpush.msra.mxu2 %v473_v19  ;;  %434 = vmatpush.msra.mxu0 %v410_v20  ;;  %v471_v25 = vld [vmem:[#allocation2 + $0x40] sm:$0xff]  ;;  %s1897_s25 = smov 16  }
  0x1c   : > { %v2014_v0 = vld [vmem:[%s359_s17] sm:$0xff]  ;;  %464 = vmatpush.msra.mxu1 %v442_v21  ;;  %s1659_s29 = sshll.u32 %s2008_s28, 4  ;;  %s353_s28 = sand.u32 1, %s1878_s10  }
  0x1d   : > { %v372_v1 = vsel %vm371_vm0, %v2014_v0, 0.0  ;;  %v1751_v3 = vpop.eup %1750  ;;  %494 = vmatpush.msra.mxu2 %v472_v22  ;;  %435 = vmatpush.msra.mxu0 %v409_v23  ;;  %v1734_v35 = vld [vmem:[%s2290_s4] ss:$0 sm:$0xff]  ;;  %v1735_v38 = vld [vmem:[%s2290_s4 + $0x1] ss:$0 sm:$0xff]  ;;  %s1656_s26 = sshll.u32 %s1969_s13, 3 }
  0x1e   : > { %373 = vadd.xlane.f32.xlu0 %v372_v1  ;;  %v376_v4 = vmul.f32 32.0, %v1751_v3  ;;  %vm380_vm1 = vweird.f32 %v1751_v3  ;;  %465 = vmatpush.msra.mxu1 %v441_v24  ;;  %v1737_v41 = vld [vmem:[%s2289_s3 + $0x1] ss:$0 sm:$0xff]  ;;  %v1736_v43 = vld [vmem:[%s2289_s3] ss:$0 sm:$0xff]  ;;  %s1495_s13 = scalar_lea.sflag [#allocation4], %s353_s28 }
  0x1f   : > { %495 = vmatpush.msra.mxu2 %v471_v25  ;;  %v1738_v46 = vld [vmem:[%s2289_s3 + $0x2] ss:$0 sm:$0xff] }
  0x20   : > { %v377_v5 = vsub.f32 1.0, %v376_v4 }
  0x22   : > { %v378_v6 = vmul.f32 %v1751_v3, %v377_v5 }
  0x24   : > { %v379_v7 = vadd.f32 %v1751_v3, %v378_v6 }
  0x26   : > { %v2018_v8 = vsel %vm380_vm1, %v1751_v3, %v379_v7 }
  0x91   : > { %v374_v9 = vpop.xlane.xlu0 %373 }
  0x92   : > { %v382_v10 = vmul.f32 %v2018_v8, %v374_v9 }
  0x94   : > { %v383_v11 = vsub.f32 %v2014_v0, %v382_v10 }
  0x96   : > { %v384_v12 = vmul.f32 %v383_v11, %v383_v11 }
  0x98   : > { %v385_v13 = vsel %vm371_vm0, %v384_v12, 0.0 }
  0x99   : > { %386 = vadd.xlane.f32.xlu0 %v385_v13 }
 0x10c   : > { %v387_v26 = vpop.xlane.xlu0 %386 }
 0x10d   : > { %v388_v27 = vmul.f32 %v387_v26, %v2018_v8 }
 0x10f   : > { %v389_v28 = vadd.f32 1e-05, %v388_v27 }
 0x111   : > { %1752 = vrsqrt.f32 %v389_v28  ;;  %vm396_vm3 = vweird.f32 %v389_v28 }
 0x117   : > { %v1753_v29 = vpop.eup %1752 }
 0x118   : > { %v391_v30 = vmul.f32 %v1753_v29, %v389_v28  ;;  %vm397_vm2 = vweird.f32 %v1753_v29 }
 0x119   : > { %vm398_vm4 = vmor %vm396_vm3, %vm397_vm2 }
 0x11a   : > { %v392_v31 = vmul.f32 %v1753_v29, %v391_v30 }
 0x11c   : > { %v393_v32 = vmul.f32 0.5, %v392_v31 }
 0x11e   : > { %v394_v33 = vsub.f32 1.5, %v393_v32 }
 0x120   : > { %v395_v34 = vmul.f32 %v1753_v29, %v394_v33 }
 0x122   : > { %v399_v36 = vsel %vm398_vm4, %v1753_v29, %v395_v34 }
 0x123   : > { %v400_v37 = vmul.f32 %v399_v36, %v383_v11 }
 0x125   : > { %v404_v39 = vmul.f32 %v1734_v35, %v400_v37 }
 0x127   : > { %v408_v40 = vadd.f32 %v1735_v38, %v404_v39 }
 0x129   : > { %1604 = vmatmul.msk.f32.vlgmr.msra.gmra.mxu0 %vm371_vm0, %v408_v40  ;;  %1606 = vmatmul.msk.f32.vlgmr.msra.gmra.mxu1 %vm371_vm0, %v408_v40 }
 0x12a   : > { %1608 = vmatmul.msk.f32.vlgmr.msra.gmra.mxu2 %vm371_vm0, %v408_v40 }
 0x1a6   : > { %v467_v42 = vpop.f32.mrf.mxu1  ;;  %v437_v45 = vpop.f32.mrf.mxu0 }
 0x1a7   : > { %v468_v44 = vadd.f32 %v1737_v41, %v467_v42  ;;  %v438_v47 = vadd.f32 %v1736_v43, %v437_v45 }
 0x1a9   : > { %577 = vrot.lane.b32.xlu0 %v468_v44, %s1892_s14  ;;  %657 = vrot.lane.b32.xlu2 %v468_v44, %s1893_s16 }
 0x1aa   : > { %1609 = vmatpush.xpose.msk.msra.mxu3 %vm500_vm5, %v468_v44 }
 0x1ad   : > { %v497_v48 = vpop.f32.mrf.mxu2  ;;  %1610 = vmatmul.msk.f32.vlgmr.msra.gmra.mxu3 %vm500_vm5, %v438_v47 }
 0x1ae   : > { %v2046_v49 = vadd.f32 %v1738_v46, %v497_v48 }
 0x1b0   : > { %570 = vmatpush.msrb.mxu3 %v2046_v49 }
 0x1b1   : > { %655 = vrot.lane.b32.xlu2 %v438_v47, %s1893_s16 }
 0x1b9   : > { %736 = vrot.lane.b32.xlu2 %v468_v44, %s1894_s22 }
 0x1c1   : > { %734 = vrot.lane.b32.xlu2 %v438_v47, %s1894_s22 }
 0x203   : > { %v658_v50 = vpop.permute.xlu2 %657 }
 0x204   : > { %1615 = vmatpush.xpose.msk.msra.mxu3 %vm500_vm5, %v658_v50 }
 0x20b   : > { %v656_v51 = vpop.permute.xlu2 %655 }
 0x213   : > { %v737_v53 = vpop.permute.xlu2 %736 }
 0x21b   : > { %v578_v52 = vpop.permute.xlu0 %577  ;;  %v735_v13 = vpop.permute.xlu2 %734 }
 0x21c   : > { %1612 = vmatpush.xpose.msk.msrb.mxu0 %vm500_vm5, %v578_v52 }
 0x220   : > { %1618 = vmatpush.xpose.msk.msra.mxu0 %vm500_vm5, %v737_v53 }
 0x230   : > { %v524_v54 = vpop.f32.mrf.mxu3 }
 0x231   : > { %v527_v55 = vmul.f32 0.35355338, %v524_v54 }
 0x233   : > { %v528_v56 = vsel %vm500_vm5, %v527_v55, -inf }
 0x234   : > { %529 = vmax.xlane.f32.xlu1 %v528_v56 }
 0x2a7   : > { %v530_v57 = vpop.xlane.xlu1 %529 }
 0x2a8   : > { %v531_v58 = vsub.f32 %v527_v55, %v530_v57 }
 0x2aa   : > { %v532_v59 = vmul.f32 1.442695, %v531_v58 }
 0x2ac   : > { %1754 = vpow2.f32 %v532_v59 }
 0x2b2   : > { %v1755_v60 = vpop.eup %1754 }
 0x2b3   : > { %v534_v61 = vsel %vm500_vm5, %v1755_v60, 0.0 }
 0x2b4   : > { %535 = vadd.xlane.f32.xlu1 %v534_v61 }
 0x2cd   : > { %575 = vrot.lane.b32.xlu1 %v438_v47, %s1892_s14 }
 0x327   : > { %v536_v62 = vpop.xlane.xlu1 %535 }
 0x328   : > { %1756 = vrcp.f32 %v536_v62  ;;  %v548_v3 = vand.u32 2147483648, %v536_v62  ;;  %v546_v5 = vand.u32 2147483647, %v536_v62  ;;  %vm542_vm7 = vweird.f32 %v536_v62 }
 0x32a   : > { %v549_v7 = vor.u32 1.1754944e-38, %v548_v3  ;;  %vm547_vm9 = vcmp.eq.f32.partialorder %v546_v5, 8.507059e+37 }
 0x32e   : > { %v1757_v63 = vpop.eup %1756 }
 0x32f   : > { %v538_v1 = vmul.f32 %v1757_v63, %v536_v62  ;;  %vm543_vm6 = vweird.f32 %v1757_v63 }
 0x330   : > { %vm544_vm8 = vmor %vm542_vm7, %vm543_vm6 }
 0x331   : > { %v539_v2 = vsub.f32 1.0, %v538_v1 }
 0x333   : > { %v540_v4 = vmul.f32 %v1757_v63, %v539_v2 }
 0x335   : > { %v541_v6 = vadd.f32 %v1757_v63, %v540_v4 }
 0x337   : > { %v545_v9 = vsel %vm544_vm8, %v1757_v63, %v541_v6  ;;  %vm826_vm8 = vcmask 130048  }
 0x338   : > { %v550_v10 = vsel %vm547_vm9, %v549_v7, %v545_v9  ;;  %vm828_vm9 = vcmask 195584  }
 0x339   : > { %v551_v11 = vmul.f32 %v1755_v60, %v550_v10 }
 0x33b   : > { %1611 = vmatmul.msk.f32.vlgmr.msrb.gmra.mxu3 %vm500_vm5, %v551_v11 }
 0x33f   : > { %v576_v12 = vpop.permute.xlu1 %575 }
 0x340   : > { %1613 = vmatmul.msk.f32.vlgmr.msrb.gmra.mxu0 %vm500_vm5, %v576_v12 }
 0x343   : > { %1616 = vmatmul.msk.f32.vlgmr.msra.gmra.mxu3 %vm500_vm5, %v656_v51 }
 0x348   : > { %1619 = vmatmul.msk.f32.vlgmr.msra.gmra.mxu0 %vm500_vm5, %v735_v13 }
 0x3bd   : > { %v600_v14 = vpop.f32.mrf.mxu0 }
 0x3be   : > { %v603_v15 = vmul.f32 0.35355338, %v600_v14  ;;  %v2062_v16 = vpop.f32.mrf.mxu3 }
 0x3c0   : > { %v604_v17 = vsel %vm500_vm5, %v603_v15, -inf }
 0x3c1   : > { %605 = vmax.xlane.f32.xlu2 %v604_v17 }
 0x3c5   : > { %v759_v18 = vpop.f32.mrf.mxu0 }
 0x3c6   : > { %v762_v19 = vmul.f32 0.35355338, %v759_v18  ;;  %v680_v20 = vpop.f32.mrf.mxu3 }
 0x3c7   : > { %v683_v21 = vmul.f32 0.35355338, %v680_v20  ;;  %v834_v20 = vld [vmem:[#allocation2 + $0x78] sm:$0xff] }
 0x3c8   : > { %v763_v22 = vsel %vm500_vm5, %v762_v19, -inf  ;;  %855 = vmatpush.msrb.mxu2 %v834_v20 }
 0x3c9   : > { %764 = vmax.xlane.f32.xlu1 %v763_v22  ;;  %v684_v23 = vsel %vm500_vm5, %v683_v21, -inf  ;;  %v832_v22 = vld [vmem:[#allocation2 + $0x68] sm:$0xff] }
 0x3ca   : > { %685 = vmax.xlane.f32.xlu0 %v684_v23  ;;  %v831_v23 = vld [vmem:[#allocation2 + $0x60] sm:$0xff] }
 0x3e2   : > { %629 = vrot.lane.b32.xlu1 %v2046_v49, %s1892_s14 }
 0x434   : > { %v606_v24 = vpop.xlane.xlu2 %605 }
 0x435   : > { %v607_v25 = vsub.f32 %v603_v15, %v606_v24 }
 0x437   : > { %v608_v26 = vmul.f32 1.442695, %v607_v25 }
 0x439   : > { %1758 = vpow2.f32 %v608_v26 }
 0x43c   : > { %v765_v27 = vpop.xlane.xlu1 %764 }
 0x43d   : > { %v766_v28 = vsub.f32 %v762_v19, %v765_v27  ;;  %v686_v29 = vpop.xlane.xlu0 %685 }
 0x43e   : > { %v687_v30 = vsub.f32 %v683_v21, %v686_v29  ;;  %v833_v21 = vld [vmem:[#allocation2 + $0x70] sm:$0xff] }
 0x43f   : > { %v1759_v31 = vpop.eup %1758  ;;  %v767_v32 = vmul.f32 1.442695, %v766_v28  ;;  %856 = vmatpush.msrb.mxu2 %v833_v21 }
 0x440   : > { %v688_v33 = vmul.f32 1.442695, %v687_v30  ;;  %v610_v34 = vsel %vm500_vm5, %v1759_v31, 0.0  ;;  %v1739_v30 = vld [vmem:[%s2289_s3 + $0x3] ss:$0 sm:$0xff] }
 0x441   : > { %1760 = vpow2.f32 %v767_v32  ;;  %611 = vadd.xlane.f32.xlu2 %v610_v34  ;;  %857 = vmatpush.msrb.mxu2 %v832_v22  ;;  %v935_v34 = vld [vmem:[#allocation2 + $0xb8] sm:$0xff] }
 0x442   : > { %1762 = vpow2.f32 %v688_v33  ;;  %959 = vmatpush.msrb.mxu0 %v935_v34  ;;  %v974_v22 = vld [vmem:[#allocation2 + $0xd8] sm:$0xff] }
 0x443   : > { %858 = vmatpush.msrb.mxu2 %v831_v23  ;;  %v973_v23 = vld [vmem:[#allocation2 + $0xd0] sm:$0xff] }
 0x447   : > { %v2070_v35 = vpop.eup %1760 }
 0x448   : > { %v1763_v36 = vpop.eup %1762  ;;  %v769_v37 = vsel %vm500_vm5, %v2070_v35, 0.0 }
 0x449   : > { %770 = vadd.xlane.f32.xlu2 %v769_v37  ;;  %v690_v38 = vsel %vm500_vm5, %v1763_v36, 0.0  ;;  %v932_v37 = vld [vmem:[#allocation2 + $0xa0] sm:$0xff] }
 0x44a   : > { %691 = vadd.xlane.f32.xlu0 %v690_v38 }
 0x454   : > { %v630_v39 = vpop.permute.xlu1 %629 }
 0x455   : > { %650 = vmatpush.msrb.mxu1 %v630_v39 }
 0x45e   : > { %708 = vrot.lane.b32.xlu0 %v2046_v49, %s1893_s16 }
 0x461   : > { %787 = vrot.lane.b32.xlu2 %v2046_v49, %s1894_s22 }
 0x4b4   : > { %v612_v40 = vpop.xlane.xlu2 %611 }
 0x4b5   : > { %1764 = vrcp.f32 %v612_v40  ;;  %v624_v46 = vand.u32 2147483648, %v612_v40  ;;  %v622_v48 = vand.u32 2147483647, %v612_v40  ;;  %vm618_vm11 = vweird.f32 %v612_v40 }
 0x4b7   : > { %v625_v52 = vor.u32 1.1754944e-38, %v624_v46  ;;  %vm623_vm13 = vcmp.eq.f32.partialorder %v622_v48, 8.507059e+37  ;;  %v900_v46 = vld [vmem:[#allocation2 + $0x88] sm:$0xff] }
 0x4bb   : > { %v1765_v41 = vpop.eup %1764 }
 0x4bc   : > { %v614_v42 = vmul.f32 %v1765_v41, %v612_v40  ;;  %v771_v43 = vpop.xlane.xlu2 %770  ;;  %vm619_vm10 = vweird.f32 %v1765_v41 }
 0x4bd   : > { %1766 = vrcp.f32 %v771_v43  ;;  %v692_v44 = vpop.xlane.xlu0 %691  ;;  %vm620_vm12 = vmor %vm618_vm11, %vm619_vm10  ;;  %v783_v60 = vand.u32 2147483648, %v771_v43  ;;  %v781_v63 = vand.u32 2147483647, %v771_v43  ;;  %vm777_vm1 = vweird.f32 %v771_v43 }
 0x4be   : > { %v615_v45 = vsub.f32 1.0, %v614_v42  ;;  %1768 = vrcp.f32 %v692_v44  ;;  %v704_v1 = vand.u32 2147483648, %v692_v44  ;;  %v702_v3 = vand.u32 2147483647, %v692_v44 }
 0x4bf   : > { %v784_v5 = vor.u32 1.1754944e-38, %v783_v60  ;;  %vm698_vm3 = vweird.f32 %v692_v44  ;;  %vm782_vm4 = vcmp.eq.f32.partialorder %v781_v63, 8.507059e+37 }
 0x4c0   : > { %v616_v47 = vmul.f32 %v1765_v41, %v615_v45  ;;  %v705_v9 = vor.u32 1.1754944e-38, %v704_v1  ;;  %vm703_vm7 = vcmp.eq.f32.partialorder %v702_v3, 8.507059e+37  ;;  %v901_v45 = vld [vmem:[#allocation2 + $0x90] sm:$0xff] }
 0x4c2   : > { %v617_v50 = vadd.f32 %v1765_v41, %v616_v47  ;;  %v899_v47 = vld [vmem:[#allocation2 + $0x80] sm:$0xff] }
 0x4c3   : > { %v1767_v51 = vpop.eup %1766 }
 0x4c4   : > { %v1769_v53 = vpop.eup %1768  ;;  %v773_v49 = vmul.f32 %v1767_v51, %v771_v43  ;;  %v788_v54 = vpop.permute.xlu2 %787  ;;  %v621_v55 = vsel %vm620_vm12, %v1765_v41, %v617_v50  ;;  %vm778_vm14 = vweird.f32 %v1767_v51 }
 0x4c5   : > { %v694_v56 = vmul.f32 %v1769_v53, %v692_v44  ;;  %808 = vmatpush.msra.mxu1 %v788_v54  ;;  %v626_v57 = vsel %vm623_vm13, %v625_v52, %v621_v55  ;;  %vm699_vm15 = vweird.f32 %v1769_v53  ;;  %vm779_vm2 = vmor %vm777_vm1, %vm778_vm14  ;;  %v902_v44 = vld [vmem:[#allocation2 + $0x98] sm:$0xff]  ;;  %v1742_v52 = vld [vmem:[%s2289_s3 + $0x5] ss:$0 sm:$0xff] }
 0x4c6   : > { %v774_v58 = vsub.f32 1.0, %v773_v49  ;;  %v627_v59 = vmul.f32 %v1759_v31, %v626_v57  ;;  %vm700_vm6 = vmor %vm698_vm3, %vm699_vm15 }
 0x4c7   : > { %v695_v61 = vsub.f32 1.0, %v694_v56 }
 0x4c8   : > { %v775_v62 = vmul.f32 %v1767_v51, %v774_v58  ;;  %1614 = vmatmul.msk.f32.vlgmr.msrb.gmra.mxu1 %vm500_vm5, %v627_v59 }
 0x4c9   : > { %v696_v2 = vmul.f32 %v1769_v53, %v695_v61  ;;  %992 = vmatpush.msrb.mxu1 %v974_v22 }
 0x4ca   : > { %v776_v4 = vadd.f32 %v1767_v51, %v775_v62  ;;  %v1740_v62 = vld [vmem:[%s2290_s4 + $0x2] ss:$0 sm:$0xff] }
 0x4cb   : > { %v697_v6 = vadd.f32 %v1769_v53, %v696_v2  ;;  %v1741_v2 = vld [vmem:[%s2290_s4 + $0x3] ss:$0 sm:$0xff]  ;;  %993 = vmatpush.msrb.mxu1 %v973_v23 }
 0x4cc   : > { %v780_v7 = vsel %vm779_vm2, %v1767_v51, %v776_v4 }
 0x4cd   : > { %v785_v10 = vsel %vm782_vm4, %v784_v5, %v780_v7  ;;  %v701_v11 = vsel %vm700_vm6, %v1769_v53, %v697_v6  ;;  %v1743_v7 = vld [vmem:[%s2289_s3 + $0x4] ss:$0 sm:$0xff] }
 0x4ce   : > { %v706_v12 = vsel %vm703_vm7, %v705_v9, %v701_v11  ;;  %v786_v13 = vmul.f32 %v2070_v35, %v785_v10  ;;  %v934_v35 = vld [vmem:[#allocation2 + $0xb0] sm:$0xff] }
 0x4cf   : > { %v707_v14 = vmul.f32 %v1763_v36, %v706_v12  ;;  %v933_v36 = vld [vmem:[#allocation2 + $0xa8] sm:$0xff]  ;;  %960 = vmatpush.msrb.mxu0 %v934_v35 }
 0x4d0   : > { %v709_v15 = vpop.permute.xlu0 %708  ;;  %1620 = vmatmul.msk.f32.vlgmr.msra.gmra.mxu1 %vm500_vm5, %v786_v13 }
 0x4d1   : > { %729 = vmatpush.msrb.mxu3 %v709_v15  ;;  %961 = vmatpush.msrb.mxu0 %v933_v36 }
 0x4d2   : > { %1617 = vmatmul.msk.f32.vlgmr.msrb.gmra.mxu3 %vm500_vm5, %v707_v14 }
 0x4d3   : > { %962 = vmatpush.msrb.mxu0 %v932_v37  ;;  %923 = vmatpush.msra.mxu3 %v902_v44 }
 0x4d5   : > { %924 = vmatpush.msra.mxu3 %v901_v45 }
 0x4d7   : > { %925 = vmatpush.msra.mxu3 %v900_v46 }
 0x4d9   : > { %926 = vmatpush.msra.mxu3 %v899_v47 }
 0x545   : > { %v652_v17 = vpop.f32.mrf.mxu1 }
 0x546   : > { %814 = vrot.lane.b32.xlu0 %v652_v17, %s1895_s23 }
 0x54d   : > { %v810_v18 = vpop.f32.mrf.mxu1 }
 0x54e   : > { %822 = vrot.lane.b32.xlu2 %v810_v18, %s2296_s24  ;;  %s364_s24 = scalar_lea.vmem %s2287_s1, %s1659_s29 }
 0x54f   : > { %v2103_v38 = vld [vmem:[%s364_s24] sm:$0xff] }
 0x550   : > { %1628 = vmatmul.msk.f32.vlgmr.msrb.gmra.mxu0 %vm371_vm0, %v2103_v38 }
 0x555   : > { %v731_v19 = vpop.f32.mrf.mxu3 }
 0x556   : > { %818 = vrot.lane.b32.xlu1 %v731_v19, %s1897_s25 }
 0x5a8   : > { %v823_v27 = vpop.permute.xlu2 %822 }
 0x5b8   : > { %v815_v24 = vpop.permute.xlu0 %814 }
 0x5b9   : > { %v825_v25 = vsel %vm500_vm5, %v2062_v16, %v815_v24  ;;  %v972_v24 = vld [vmem:[#allocation2 + $0xc8] sm:$0xff] }
 0x5ba   : > { %994 = vmatpush.msrb.mxu1 %v972_v24 }
 0x5c8   : > { %v819_v26 = vpop.permute.xlu1 %818 }
 0x5c9   : > { %v827_v28 = vsel %vm826_vm8, %v825_v25, %v819_v26  ;;  %v971_v25 = vld [vmem:[#allocation2 + $0xc0] sm:$0xff] }
 0x5ca   : > { %v829_v29 = vsel %vm828_vm9, %v827_v28, %v823_v27  ;;  %995 = vmatpush.msrb.mxu1 %v971_v25 }
 0x5cb   : > { %1622 = vmatmul.msk.f32.vlgmr.msrb.gmra.mxu2 %vm371_vm0, %v829_v29  ;;  %1631 = vmatmul.msk.f32.vlgmr.msrb.gmra.mxu1 %vm371_vm0, %v2103_v38 }
 0x5cd   : > { %v964_v48 = vpop.f32.mrf.mxu0 }
 0x5ce   : > { %v965_v55 = vadd.f32 %v1742_v52, %v964_v48 }
 0x64e   : > { %v860_v31 = vpop.f32.mrf.mxu2 }
 0x64f   : > { %v861_v32 = vadd.f32 %v1739_v30, %v860_v31 }
 0x651   : > { %v2095_v33 = vadd.f32 %v861_v32, %v2014_v0  ;;  %v2107_v0 = vld [vmem:[%s364_s24 + $0x8] sm:$0xff]  ;;  %s1599_s24 = sshll.u32 %s353_s28, 3 }
 0x652   : > { %1629 = vmatmul.msk.f32.gmra.mxu0 %vm371_vm0, %v2107_v0  ;;  %1632 = vmatmul.msk.f32.gmra.mxu1 %vm371_vm0, %v2107_v0  ;;  %s355_s27 = scalar_lea.vmem [#allocation5], %s1599_s24 }
 0x653   : > { %v868_v16 = vsel %vm371_vm0, %v2095_v33, 0.0  ;;  %s1507_s29 = sshll.u32 %s355_s27, 4  ;;  %s1508_s29 = int_to_ptr.vmem [resolvable:$true] %s1507_s29 }
 0x654   : > { %869 = vadd.xlane.f32.xlu0 %v868_v16 }
 0x6c7   : > { %v870_v39 = vpop.xlane.xlu0 %869 }
 0x6c8   : > { %v871_v40 = vmul.f32 %v870_v39, %v2018_v8  ;;  %v997_v39 = vpop.f32.mrf.mxu1 }
 0x6ca   : > { %v872_v41 = vsub.f32 %v2095_v33, %v871_v40  ;;  %v1744_v40 = vld [vmem:[%s2289_s3 + $0x6] ss:$0 sm:$0xff] }
 0x6cc   : > { %v873_v42 = vmul.f32 %v872_v41, %v872_v41 }
 0x6ce   : > { %v874_v43 = vsel %vm371_vm0, %v873_v42, 0.0  ;;  %v998_v42 = vadd.f32 %v1744_v40, %v997_v39 }
 0x6cf   : > { %875 = vadd.xlane.f32.xlu1 %v874_v43  ;;  %v967_v49 = vpop.f32.mrf.mxu0 }
 0x6d0   : > { %v968_v54 = vadd.f32 %v1742_v52, %v967_v49 }
 0x6d2   : > { %1084 = vrot.lane.b32.xlu2 %v968_v54, %s1892_s14  ;;  %1633 = vmatpush.xpose.msk.msra.mxu2 %vm500_vm5, %v968_v54 }
 0x6d6   : > { %1634 = vmatpush.xpose.msk.msra.mxu2 %vm500_vm5, %v965_v55 }
 0x6da   : > { %1082 = vrot.lane.b32.xlu2 %v965_v55, %s1892_s14 }
 0x6e2   : > { %1258 = vrot.lane.b32.xlu2 %v968_v54, %s1894_s22 }
 0x6e8   : > { %1172 = vrot.lane.b32.xlu1 %v968_v54, %s1893_s16 }
 0x72c   : > { %v1085_v5 = vpop.permute.xlu2 %1084 }
 0x72d   : > { %1637 = vmatpush.xpose.msk.msrb.mxu2 %vm500_vm5, %v1085_v5 }
 0x734   : > { %v1083_v11 = vpop.permute.xlu2 %1082 }
 0x735   : > { %1638 = vmatpush.xpose.msk.msrb.mxu2 %vm500_vm5, %v1083_v11 }
 0x73c   : > { %v1259_v12 = vpop.permute.xlu2 %1258 }
 0x742   : > { %v876_v50 = vpop.xlane.xlu1 %875 }
 0x743   : > { %v877_v51 = vmul.f32 %v876_v50, %v2018_v8 }
 0x745   : > { %v878_v53 = vadd.f32 1e-05, %v877_v51 }
 0x747   : > { %1770 = vrsqrt.f32 %v878_v53  ;;  %vm885_vm11 = vweird.f32 %v878_v53 }
 0x74d   : > { %v1771_v56 = vpop.eup %1770 }
 0x74e   : > { %v880_v57 = vmul.f32 %v1771_v56, %v878_v53  ;;  %vm886_vm10 = vweird.f32 %v1771_v56 }
 0x74f   : > { %vm887_vm12 = vmor %vm885_vm11, %vm886_vm10 }
 0x750   : > { %v881_v58 = vmul.f32 %v1771_v56, %v880_v57 }
 0x752   : > { %v882_v59 = vmul.f32 0.5, %v881_v58 }
 0x754   : > { %v883_v60 = vsub.f32 1.5, %v882_v59 }
 0x756   : > { %v884_v61 = vmul.f32 %v1771_v56, %v883_v60 }
 0x758   : > { %v888_v63 = vsel %vm887_vm12, %v1771_v56, %v884_v61 }
 0x759   : > { %v889_v1 = vmul.f32 %v888_v63, %v872_v41  ;;  %v1000_v41 = vpop.f32.mrf.mxu1 }
 0x75a   : > { %v1173_v6 = vpop.permute.xlu1 %1172  ;;  %v1001_v43 = vadd.f32 %v1744_v40, %v1000_v41 }
 0x75b   : > { %v893_v3 = vmul.f32 %v1740_v62, %v889_v1  ;;  %1641 = vmatpush.xpose.msk.msra.mxu0 %vm500_vm5, %v1173_v6 }
 0x75c   : > { %1074 = vmatpush.msrb.mxu3 %v1001_v43  ;;  %v1719_v59 = vpack.i.bf16 %v998_v42, %v1001_v43 }
 0x75d   : > { %v897_v4 = vadd.f32 %v1741_v2, %v893_v3 }
 0x75e   : > { %1075 = vmatpush.msrb.mxu3 %v998_v42 }
 0x75f   : > { %1626 = vmatmul.msk.f32.vlgmr.msra.gmra.mxu3 %vm371_vm0, %v897_v4 }
 0x7e2   : > { %v928_v9 = vpop.f32.mrf.mxu3 }
 0x7e3   : > { %v929_v10 = vadd.f32 %v1743_v7, %v928_v9 }
 0x7e5   : > { %1254 = vrot.lane.b32.xlu0 %v929_v10, %s1894_s22  ;;  %1080 = vrot.lane.b32.xlu2 %v929_v10, %s1892_s14 }
 0x7e6   : > { %1635 = vmatmul.msk.f32.vlgmr.msra.gmra.mxu2 %vm500_vm5, %v929_v10 }
 0x7e7   : > { %1645 = vmatpush.xpose.msk.msra.mxu2 %vm500_vm5, %v1259_v12 }
 0x7ed   : > { %1256 = vrot.lane.b32.xlu2 %v965_v55, %s1894_s22 }
 0x7f5   : > { %1170 = vrot.lane.b32.xlu2 %v965_v55, %s1893_s16 }
 0x7fd   : > { %1168 = vrot.lane.b32.xlu2 %v929_v10, %s1893_s16 }
 0x83f   : > { %v1081_v13 = vpop.permute.xlu2 %1080 }
 0x840   : > { %1639 = vmatmul.msk.f32.vlgmr.msrb.gmra.mxu2 %vm500_vm5, %v1081_v13 }
 0x847   : > { %v1257_v14 = vpop.permute.xlu2 %1256 }
 0x848   : > { %1646 = vmatpush.xpose.msk.msra.mxu2 %vm500_vm5, %v1257_v14 }
 0x84f   : > { %v1171_v15 = vpop.permute.xlu2 %1170 }
 0x850   : > { %1642 = vmatpush.xpose.msk.msra.mxu0 %vm500_vm5, %v1171_v15 }
 0x857   : > { %v1255_v17 = vpop.permute.xlu0 %1254  ;;  %v1169_v18 = vpop.permute.xlu2 %1168 }
 0x858   : > { %1643 = vmatmul.msk.f32.vlgmr.msra.gmra.mxu0 %vm500_vm5, %v1169_v18  ;;  %1647 = vmatmul.msk.f32.vlgmr.msra.gmra.mxu2 %vm500_vm5, %v1255_v17 }
 0x869   : > { %v1029_v19 = vpop.f32.mrf.mxu2 }
 0x86a   : > { %v1032_v20 = vmul.f32 0.35355338, %v1029_v19 }
 0x86c   : > { %v1033_v21 = vsel %vm826_vm8, %v1032_v20, -inf }
 0x86d   : > { %1034 = vmax.xlane.f32.xlu0 %v1033_v21 }
 0x8c3   : > { %v1109_v26 = vpop.f32.mrf.mxu2 }
 0x8c4   : > { %v1112_v27 = vmul.f32 0.35355338, %v1109_v26 }
 0x8c6   : > { %v1113_v28 = vsel %vm826_vm8, %v1112_v27, -inf }
 0x8c7   : > { %1114 = vmax.xlane.f32.xlu2 %v1113_v28 }
 0x8d5   : > { %v1197_v29 = vpop.f32.mrf.mxu0 }
 0x8d6   : > { %v1200_v30 = vmul.f32 0.35355338, %v1197_v29 }
 0x8d8   : > { %v1201_v31 = vsel %vm826_vm8, %v1200_v30, -inf }
 0x8d9   : > { %1202 = vmax.xlane.f32.xlu0 %v1201_v31 }
 0x8db   : > { %v1283_v32 = vpop.f32.mrf.mxu2 }
 0x8dc   : > { %v1286_v16 = vmul.f32 0.35355338, %v1283_v32 }
 0x8de   : > { %v1287_v34 = vsel %vm826_vm8, %v1286_v16, -inf }
 0x8df   : > { %1288 = vmax.xlane.f32.xlu1 %v1287_v34 }
 0x8e0   : > { %v1035_v35 = vpop.xlane.xlu0 %1034 }
 0x8e1   : > { %v1036_v36 = vsub.f32 %v1032_v20, %v1035_v35 }
 0x8e3   : > { %v1037_v37 = vmul.f32 1.442695, %v1036_v36 }
 0x8e5   : > { %1772 = vpow2.f32 %v1037_v37 }
 0x8eb   : > { %v1773_v38 = vpop.eup %1772 }
 0x8ec   : > { %v1039_v0 = vsel %vm826_vm8, %v1773_v38, 0.0 }
 0x8ed   : > { %1040 = vadd.xlane.f32.xlu2 %v1039_v0 }
 0x93a   : > { %v1115_v44 = vpop.xlane.xlu2 %1114 }
 0x93b   : > { %v1116_v45 = vsub.f32 %v1112_v27, %v1115_v44 }
 0x93d   : > { %v1117_v46 = vmul.f32 1.442695, %v1116_v45 }
 0x93f   : > { %1774 = vpow2.f32 %v1117_v46 }
 0x945   : > { %v2161_v47 = vpop.eup %1774 }
 0x946   : > { %v1119_v48 = vsel %vm826_vm8, %v2161_v47, 0.0 }
 0x947   : > { %1120 = vadd.xlane.f32.xlu1 %v1119_v48 }
 0x94c   : > { %v1203_v50 = vpop.xlane.xlu0 %1202 }
 0x94d   : > { %v1204_v51 = vsub.f32 %v1200_v30, %v1203_v50 }
 0x94f   : > { %v1205_v52 = vmul.f32 1.442695, %v1204_v51 }
 0x951   : > { %1776 = vpow2.f32 %v1205_v52 }
 0x952   : > { %v1289_v53 = vpop.xlane.xlu1 %1288 }
 0x953   : > { %v1290_v49 = vsub.f32 %v1286_v16, %v1289_v53 }
 0x955   : > { %v1291_v54 = vmul.f32 1.442695, %v1290_v49 }
 0x957   : > { %v2165_v55 = vpop.eup %1776  ;;  %1778 = vpow2.f32 %v1291_v54 }
 0x958   : > { %v1207_v56 = vsel %vm826_vm8, %v2165_v55, 0.0 }
 0x959   : > { %1208 = vadd.xlane.f32.xlu2 %v1207_v56 }
 0x95d   : > { %v2169_v57 = vpop.eup %1778 }
 0x95e   : > { %v1293_v58 = vsel %vm826_vm8, %v2169_v57, 0.0 }
 0x95f   : > { %1294 = vadd.xlane.f32.xlu0 %v1293_v58 }
 0x960   : > { %v1041_v60 = vpop.xlane.xlu2 %1040  ;;  %1720 = vrot.lane.b32.xlu1 %v1719_v59, %s1892_s14  ;;  %s2299_s14 = smov 24  }
 0x961   : > { %1780 = vrcp.f32 %v1041_v60  ;;  %v1053_v1 = vand.u32 2147483648, %v1041_v60  ;;  %v1051_v3 = vand.u32 2147483647, %v1041_v60  ;;  %vm1047_vm14 = vweird.f32 %v1041_v60 }
 0x963   : > { %v1054_v5 = vor.u32 1.1754944e-38, %v1053_v1  ;;  %vm1052_vm1 = vcmp.eq.f32.partialorder %v1051_v3, 8.507059e+37 }
 0x967   : > { %v1781_v61 = vpop.eup %1780 }
 0x968   : > { %v1043_v62 = vmul.f32 %v1781_v61, %v1041_v60  ;;  %vm1048_vm13 = vweird.f32 %v1781_v61  ;;  %v1359_v60 = vld [vmem:[#allocation2 + $0xf8] sm:$0xff] }
 0x969   : > { %vm1049_vm15 = vmor %vm1047_vm14, %vm1048_vm13  ;;  %1380 = vmatpush.msrb.mxu0 %v1359_v60 }
 0x96a   : > { %v1044_v63 = vsub.f32 1.0, %v1043_v62  ;;  %v1357_v62 = vld [vmem:[#allocation2 + $0xe8] sm:$0xff] }
 0x96c   : > { %v1045_v2 = vmul.f32 %v1781_v61, %v1044_v63 }
 0x96e   : > { %v1046_v4 = vadd.f32 %v1781_v61, %v1045_v2 }
 0x970   : > { %v1050_v6 = vsel %vm1049_vm15, %v1781_v61, %v1046_v4  ;;  %v1358_v61 = vld [vmem:[#allocation2 + $0xf0] sm:$0xff] }
 0x971   : > { %v1055_v7 = vsel %vm1052_vm1, %v1054_v5, %v1050_v6  ;;  %1730 = vrot.lane.b32.xlu2 %v1719_v59, %s1893_s16  ;;  %1381 = vmatpush.msrb.mxu0 %v1358_v61  ;;  %v1745_v6 = vld [vmem:[%s2289_s3 + $0x7] ss:$0 sm:$0xff]  ;;  %s1840_s16 = scalar_lea.hbm %s2295_s9, 16 }
 0x972   : > { %v1056_v9 = vmul.f32 %v1773_v38, %v1055_v7 }
 0x973   : > { %1725 = vrot.lane.b32.xlu0 %v1719_v59, %s1894_s22  ;;  %1382 = vmatpush.msrb.mxu0 %v1357_v62 }
 0x974   : > { %1636 = vmatmul.msk.f32.vlgmr.msrb.gmra.mxu3 %vm826_vm8, %v1056_v9 }
 0x9ba   : > { %v1121_v10 = vpop.xlane.xlu1 %1120 }
 0x9bb   : > { %1782 = vrcp.f32 %v1121_v10  ;;  %v1133_v18 = vand.u32 2147483648, %v1121_v10  ;;  %vm1127_vm3 = vweird.f32 %v1121_v10  ;;  %v1131_v19 = vand.u32 2147483647, %v1121_v10 }
 0x9bd   : > { %v1134_v21 = vor.u32 1.1754944e-38, %v1133_v18  ;;  %vm1132_vm6 = vcmp.eq.f32.partialorder %v1131_v19, 8.507059e+37  ;;  %v1426_v18 = vld [vmem:[%s2291_s5 + $0x18] sm:$0xff]  ;;  %v1424_v19 = vld [vmem:[%s2291_s5 + $0x8] sm:$0xff] }
 0x9c1   : > { %v1783_v11 = vpop.eup %1782 }
 0x9c2   : > { %v1123_v12 = vmul.f32 %v1783_v11, %v1121_v10  ;;  %vm1128_vm2 = vweird.f32 %v1783_v11 }
 0x9c3   : > { %vm1129_vm4 = vmor %vm1127_vm3, %vm1128_vm2  ;;  %vm1467_vm2 = vcmask 523264  }
 0x9c4   : > { %v1124_v13 = vsub.f32 1.0, %v1123_v12 }
 0x9c6   : > { %v1125_v14 = vmul.f32 %v1783_v11, %v1124_v13 }
 0x9c8   : > { %v1126_v17 = vadd.f32 %v1783_v11, %v1125_v14 }
 0x9ca   : > { %v1130_v20 = vsel %vm1129_vm4, %v1783_v11, %v1126_v17 }
 0x9cb   : > { %v1135_v25 = vsel %vm1132_vm6, %v1134_v21, %v1130_v20  ;;  %v1423_v20 = vld [vmem:[%s2291_s5] sm:$0xff]  ;;  %v1462_v21 = vld [vmem:[%s2293_s7 + $0x38] sm:$0xff] }
 0x9cc   : > { %v1209_v15 = vpop.xlane.xlu2 %1208  ;;  %v1136_v34 = vmul.f32 %v2161_v47, %v1135_v25  ;;  %1479 = vmatpush.msrb.mxu2 %v1462_v21 }
 0x9cd   : > { %1784 = vrcp.f32 %v1209_v15  ;;  %v1221_v32 = vand.u32 2147483648, %v1209_v15  ;;  %v1219_v36 = vand.u32 2147483647, %v1209_v15  ;;  %vm1215_vm10 = vweird.f32 %v1209_v15 }
 0x9cf   : > { %v1222_v39 = vor.u32 1.1754944e-38, %v1221_v32  ;;  %vm1220_vm12 = vcmp.eq.f32.partialorder %v1219_v36, 8.507059e+37 }
 0x9d2   : > { %v1295_v22 = vpop.xlane.xlu0 %1294  ;;  %v1721_v23 = vpop.permute.xlu1 %1720 }
 0x9d3   : > { %v1785_v24 = vpop.eup %1784  ;;  %1786 = vrcp.f32 %v1295_v22  ;;  %v1722_v27 = vunpack.i.l.bf16 %v1721_v23  ;;  %v1723_v31 = vunpack.i.h.bf16 %v1721_v23  ;;  %v1307_v46 = vand.u32 2147483648, %v1295_v22  ;;  %v1460_v23 = vld [vmem:[%s2293_s7 + $0x28] sm:$0xff] }
 0x9d4   : > { %v1211_v26 = vmul.f32 %v1785_v24, %v1209_v15  ;;  %v1731_v28 = vpop.permute.xlu2 %1730  ;;  %vm1216_vm7 = vweird.f32 %v1785_v24  ;;  %vm1301_vm14 = vweird.f32 %v1295_v22  ;;  %v1305_v47 = vand.u32 2147483647, %v1295_v22 }
 0x9d5   : > { %v1732_v29 = vunpack.i.l.bf16 %v1731_v28  ;;  %1162 = vmatpush.msra.mxu3 %v1722_v27  ;;  %v1733_v16 = vunpack.i.h.bf16 %v1731_v28  ;;  %vm1217_vm11 = vmor %vm1215_vm10, %vm1216_vm7  ;;  %v1308_v50 = vor.u32 1.1754944e-38, %v1307_v46  ;;  %v1458_v28 = vld [vmem:[%s2293_s7 + $0x18] sm:$0xff]  ;;  %v1749_v46 = vld [vmem:[%s2294_s8] ss:$0 sm:$0xff] }
 0x9d6   : > { %v1212_v30 = vsub.f32 1.0, %v1211_v26  ;;  %vm1306_vm1 = vcmp.eq.f32.partialorder %v1305_v47, 8.507059e+37  ;;  %v1459_v26 = vld [vmem:[%s2293_s7 + $0x20] sm:$0xff] }
 0x9d7   : > { %1248 = vmatpush.msra.mxu1 %v1732_v29  ;;  %1163 = vmatpush.msra.mxu3 %v1723_v31 }
 0x9d8   : > { %v1213_v35 = vmul.f32 %v1785_v24, %v1212_v30  ;;  %1640 = vmatmul.msk.f32.vlgmr.msra.gmra.mxu3 %vm826_vm8, %v1136_v34  ;;  %v1746_v34 = vld [vmem:[%s2290_s4 + $0x4] ss:$0 sm:$0xff] }
 0x9d9   : > { %v1787_v37 = vpop.eup %1786  ;;  %1249 = vmatpush.msra.mxu1 %v1733_v16 }
 0x9da   : > { %v1214_v38 = vadd.f32 %v1785_v24, %v1213_v35  ;;  %v1297_v0 = vmul.f32 %v1787_v37, %v1295_v22  ;;  %vm1302_vm13 = vweird.f32 %v1787_v37  ;;  %v1461_v22 = vld [vmem:[%s2293_s7 + $0x30] sm:$0xff] }
 0x9db   : > { %vm1303_vm15 = vmor %vm1301_vm14, %vm1302_vm13  ;;  %1446 = vmatpush.msrb.mxu1 %v1426_v18  ;;  %1480 = vmatpush.msrb.mxu2 %v1461_v22 }
 0x9dc   : > { %v1218_v40 = vsel %vm1217_vm11, %v1785_v24, %v1214_v38  ;;  %v1298_v41 = vsub.f32 1.0, %v1297_v0 }
 0x9dd   : > { %v1223_v42 = vsel %vm1220_vm12, %v1222_v39, %v1218_v40  ;;  %1481 = vmatpush.msrb.mxu2 %v1460_v23  ;;  %v1457_v39 = vld [vmem:[%s2293_s7 + $0x10] sm:$0xff]  ;;  %v1456_v40 = vld [vmem:[%s2293_s7 + $0x8] sm:$0xff] }
 0x9de   : > { %v1299_v43 = vmul.f32 %v1787_v37, %v1298_v41  ;;  %v1224_v44 = vmul.f32 %v2165_v55, %v1223_v42  ;;  %v1455_v41 = vld [vmem:[%s2293_s7] sm:$0xff] }
 0x9df   : > { %1482 = vmatpush.msrb.mxu2 %v1459_v26  ;;  %v1748_v42 = vld [vmem:[%s2292_s6] ss:$0 sm:$0xff] }
 0x9e0   : > { %v1300_v45 = vadd.f32 %v1787_v37, %v1299_v43  ;;  %1644 = vmatmul.msk.f32.vlgmr.msra.gmra.mxu1 %vm826_vm8, %v1224_v44 }
 0x9e1   : > { %1483 = vmatpush.msrb.mxu2 %v1458_v28 }
 0x9e2   : > { %v1304_v48 = vsel %vm1303_vm15, %v1787_v37, %v1300_v45  ;;  %v1747_v37 = vld [vmem:[%s2290_s4 + $0x5] ss:$0 sm:$0xff] }
 0x9e3   : > { %v1309_v52 = vsel %vm1306_vm1, %v1308_v50, %v1304_v48  ;;  %1484 = vmatpush.msrb.mxu2 %v1457_v39 }
 0x9e4   : > { %v1310_v54 = vmul.f32 %v2169_v57, %v1309_v52  ;;  %v1356_v57 = vld [vmem:[#allocation2 + $0xe0] sm:$0xff] }
 0x9e5   : > { %v1726_v51 = vpop.permute.xlu0 %1725  ;;  %1383 = vmatpush.msrb.mxu0 %v1356_v57  ;;  %1485 = vmatpush.msrb.mxu2 %v1456_v40 }
 0x9e6   : > { %v1727_v53 = vunpack.i.l.bf16 %v1726_v51  ;;  %v1728_v49 = vunpack.i.h.bf16 %v1726_v51 }
 0x9e7   : > { %1486 = vmatpush.msrb.mxu2 %v1455_v41 }
 0x9e8   : > { %1334 = vmatpush.msrb.mxu3 %v1727_v53 }
 0x9ea   : > { %1335 = vmatpush.msrb.mxu3 %v1728_v49 }
 0x9eb   : > { %1648 = vmatmul.msk.f32.vlgmr.msrb.gmra.mxu3 %vm826_vm8, %v1310_v54 }
 0x9f7   : > { %v1077_v55 = vpop.f32.mrf.mxu3 }
 0xa5b   : > { %v1165_v56 = vpop.f32.mrf.mxu3 }
 0xa5c   : > { %1341 = vrot.lane.b32.xlu0 %v1165_v56, %s1895_s23 }
 0xa5d   : > { %v1251_v58 = vpop.f32.mrf.mxu1 }
 0xa5e   : > { %1345 = vrot.lane.b32.xlu1 %v1251_v58, %s1897_s25  ;;  %s1505_s25 = scalar_lea.hbm %s2295_s9, %s1656_s26 }
 0xa5f   : > { %s1509_s17 = sshll.u32 %s1505_s25, 4  ;;  %s1510_s17 = int_to_ptr.hbm [resolvable:$true] %s1509_s17 }
 0xa60   : > { %s1834_s21 = sshra.s32 %s1510_s17, 4  ;;  %s1835_s21 = int_to_ptr.hbm [resolvable:$true] %s1834_s21 }
 0xa61   : > { %p1841_p3 = scmp.lt.s32.totalorder %s1835_s21, %s2295_s9 }
 0xa6e   : > { %v1337_v59 = vpop.f32.mrf.mxu3 }
 0xa6f   : > { %1349 = vrot.lane.b32.xlu2 %v1337_v59, %s2299_s14  ;;  %s1836_s14 = scalar_lea.hbm %s1835_s21, 8 }
 0xa70   : > { %p1837_p0 = scmp.ne.s32.totalorder %s1835_s21, %s1836_s14  ;;  %p1842_p4 = scmp.lt.s32.totalorder %s1840_s16, %s1836_s14 }
 0xa72   : > { %p1838_p1 = pnand %p1837_p0, %p1986_p5  ;;  %p1843_p7 = por %p1842_p4, %p1841_p3 }
 0xa74   : > { %p1839_p2 = pneg %p1838_p1 }
 0xa76   : > { %p1844_p8 = pnand %p1843_p7, %p1839_p2 }
 0xac9   : > { %v1350_v3 = vpop.permute.xlu2 %1349 }
 0xace   : > { %v1342_v63 = vpop.permute.xlu0 %1341 }
 0xacf   : > { %v1352_v1 = vsel %vm500_vm5, %v1077_v55, %v1342_v63 }
 0xad0   : > { %v1346_v2 = vpop.permute.xlu1 %1345 }
 0xad1   : > { %v1353_v4 = vsel %vm826_vm8, %v1352_v1, %v1346_v2 }
 0xad2   : > { %v1354_v5 = vsel %vm828_vm9, %v1353_v4, %v1350_v3 }
 0xad3   : > { %1650 = vmatmul.msk.f32.vlgmr.msrb.gmra.mxu0 %vm371_vm0, %v1354_v5 }
 0xb50   : > { %v1385_v7 = vpop.f32.mrf.mxu0 }
 0xb51   : > { %v1386_v9 = vadd.f32 %v1745_v6, %v1385_v7 }
 0xb53   : > { %v2194_v10 = vadd.f32 %v1386_v9, %v2095_v33  ;;  %v1425_v33 = vld [vmem:[%s2291_s5 + $0x10] sm:$0xff] }
 0xb54   : > { %1447 = vmatpush.msrb.mxu1 %v1425_v33 }
 0xb55   : > { %v1393_v11 = vsel %vm371_vm0, %v2194_v10, 0.0 }
 0xb56   : > { %1394 = vadd.xlane.f32.xlu0 %v1393_v11  ;;  %1448 = vmatpush.msrb.mxu1 %v1424_v19 }
 0xb58   : > { %1449 = vmatpush.msrb.mxu1 %v1423_v20 }
 0xbc9   : > { %v1395_v12 = vpop.xlane.xlu0 %1394 }
 0xbca   : > { %v1396_v13 = vmul.f32 %v1395_v12, %v2018_v8 }
 0xbcc   : > { %v1397_v14 = vsub.f32 %v2194_v10, %v1396_v13 }
 0xbce   : > { %v1398_v15 = vmul.f32 %v1397_v14, %v1397_v14 }
 0xbd0   : > { %v1399_v17 = vsel %vm371_vm0, %v1398_v15, 0.0 }
 0xbd1   : > { %1400 = vadd.xlane.f32.xlu1 %v1399_v17 }
 0xc44   : > { %v1401_v24 = vpop.xlane.xlu1 %1400 }
 0xc45   : > { %v1402_v25 = vmul.f32 %v1401_v24, %v2018_v8 }
 0xc47   : > { %v1403_v27 = vadd.f32 1e-05, %v1402_v25 }
 0xc49   : > { %1788 = vrsqrt.f32 %v1403_v27  ;;  %vm1410_vm8 = vweird.f32 %v1403_v27 }
 0xc4f   : > { %v1789_v29 = vpop.eup %1788 }
 0xc50   : > { %v1405_v30 = vmul.f32 %v1789_v29, %v1403_v27  ;;  %vm1411_vm5 = vweird.f32 %v1789_v29 }
 0xc51   : > { %vm1412_vm9 = vmor %vm1410_vm8, %vm1411_vm5 }
 0xc52   : > { %v1406_v31 = vmul.f32 %v1789_v29, %v1405_v30 }
 0xc54   : > { %v1407_v32 = vmul.f32 0.5, %v1406_v31 }
 0xc56   : > { %v1408_v16 = vsub.f32 1.5, %v1407_v32 }
 0xc58   : > { %v1409_v8 = vmul.f32 %v1789_v29, %v1408_v16 }
 0xc5a   : > { %v1413_v35 = vsel %vm1412_vm9, %v1789_v29, %v1409_v8 }
 0xc5b   : > { %v1414_v36 = vmul.f32 %v1413_v35, %v1397_v14 }
 0xc5d   : > { %v1418_v38 = vmul.f32 %v1746_v34, %v1414_v36 }
 0xc5f   : > { %v1422_v0 = vadd.f32 %v1747_v37, %v1418_v38 }
 0xc61   : > { %1653 = vmatmul.msk.f32.vlgmr.msrb.gmra.mxu1 %vm371_vm0, %v1422_v0 }
 0xcde   : > { %v1451_v43 = vpop.f32.mrf.mxu1 }
 0xcdf   : > { %v1452_v44 = vadd.f32 %v1748_v42, %v1451_v43 }
 0xce1   : > { %v1454_v45 = vmax.f32 %v1452_v44, 0.0 }
 0xce3   : > { %1654 = vmatmul.msk.f32.vlgmr.msrb.gmra.mxu2 %vm1467_vm2, %v1454_v45 }
 0xd66   : > { %v1488_v47 = vpop.f32.mrf.mxu2 }
 0xd67   : > { %v1489_v48 = vadd.f32 %v1749_v46, %v1488_v47 }
 0xd69   : > { %v1491_v50 = vadd.f32 %v1489_v48, %v2194_v10 }
 0xd6b   : > { %v1492_v51 = vadd.f32 %v1491_v50, %v2194_v10 }
 0xd6d   : > { %1493 = vst.msk [vmem:[%s355_s27] sm:$0xff] %vm371_vm0, %v1492_v51 }
 0xd6e   : > { %1847 = shalt.err (!%p1844_p8)
}
 0xd6f   : > { %1664 = dma.vmem_to_hbm [thread:$0]  (%p1986_p5), %s1508_s29, 128, %s1510_s17, %s1495_s13  }
 0xd70 PF: > { %p1676_p9 = scmp.ge.s32.totalorder %s1886_s12, 2  ;;  %s1521_s28 = sand.u32 1, %s1874_s30  }
 0xd71   : > { %s1522_s25 = scalar_lea.sflag [#allocation4], %s1521_s28 }
 0xd72   : > { %p1671_p10 = pnand %p1676_p9, %p1990_p6 }
 0xd74   : > { %p1672_p11 = pneg %p1671_p10 }
 0xd76   : > { %1869 = dma.done.wait (%p1672_p11), %s1522_s25, 128  }
 0xd77   : > { %1871 = vsyncadd (%p1672_p11), %s1522_s25, 4294967168  ;;  %p20_p12 = scmp.ge.s32.totalorder %s1973_s15, 4   ;;  %s2300_s30 = smov %s1878_s10 }
 0xd78   : > { %s2301_s10 = smov %s1882_s11  ;;  %s2302_s11 = smov %s1984_s18 }
 0xd79   : > { %s2303_s12 = smov %s1973_s15  ;;  %22 = sbr.rel (!%p20_p12) target bundleno = 4 (0x4), region = 118 }
 0xd7e   :  { %1528 = vsyncpa [#allocation3], 1 }
 0xd7f   :  { %1530 = vsyncpa [#allocation3 + $0x1], 1 }
 0xd80   :  { %1531 = vsyncpa [#allocation4], 1 }
 0xd81   :  { %1533 = vsyncpa [#allocation4 + $0x1], 1 }

</bundles_post_ra>
